<compile_context>
chip_gen: v6e
topology: v6e:2x2x1
jax: 0.10.0
libtpu: 0.0.40
codegen_flags: <defaults>
</compile_context>

<pallas_src>
import jax
import jax.numpy as jnp
from jax.experimental import pallas as pl
from jax.experimental.pallas import tpu as pltpu


# ---------------------------------------------------------------------------
# Pre-pass: x_pooled -> gates_x projection as ONE MXU matmul (B, T folded into M).
# Input rows are ordered (t, b, y); columns (ky, x, cin); output columns (gate, x, cout).
# ---------------------------------------------------------------------------
def _prepass_kernel(x_ref, w_ref, o_ref):
    o_ref[...] = jnp.dot(x_ref[...], w_ref[...],
                         preferred_element_type=jnp.float32).astype(o_ref.dtype)


def conv_gates_x(x_lhs, wx_big):
    """x_lhs: (T*B*Hp, 3*Wp*Cin) bf16; wx_big: (3*Wp*Cin, 4*Wp*Cout) bf16
       -> gates_x: (T*B*Hp, 4*Wp*Cout) bf16 (rows (t,b,y), cols (gate,x,c))."""
    M, K = x_lhs.shape
    N = wx_big.shape[1]
    return pl.pallas_call(
        _prepass_kernel,
        out_shape=jax.ShapeDtypeStruct((M, N), jnp.bfloat16),
        grid=(1,),
        in_specs=[pl.BlockSpec((M, K), lambda i: (0, 0)),
                  pl.BlockSpec((K, N), lambda i: (0, 0))],
        out_specs=pl.BlockSpec((M, N), lambda i: (0, 0)),
        compiler_params=pltpu.CompilerParams(
            dimension_semantics=("arbitrary",),
            vmem_limit_bytes=32 * 1024 * 1024),
    )(x_lhs, wx_big)


# ---------------------------------------------------------------------------
# Recurrent ConvLSTM step (num_layers=1, batch_first=True, bias=False).
# h/c stay resident in VMEM in a lane-dense (B*Hp, Wp*Cout) layout.  Per step:
#   3 dy taps = S[ky] @ h (tiny MXU selection matmuls, no VMEM relayout copies),
#   each followed by one (16, 256) x (256, 1024) bf16 matmul against the dx-banded weight.
# ---------------------------------------------------------------------------
def _make_recurrent_kernel(Hp, Wp, Cout):
    Lh = Wp * Cout

    def kernel(gx_ref, wh_ref, s_ref, o_ref, h_ref, c_ref):
        t = pl.program_id(0)

        @pl.when(t == 0)
        def _():
            h_ref[...] = jnp.zeros_like(h_ref)
            c_ref[...] = jnp.zeros_like(c_ref)

        hb = h_ref[...].astype(jnp.bfloat16)            # (R, Lh) bf16 matmul operand
        gates = gx_ref[...].astype(jnp.float32)         # (R, 4*Lh) f32 accumulator

        for ky in range(3):                              # unrolled; MXU has slack here
            shifted = jnp.dot(s_ref[ky], hb,             # dy tap via 0/1 selection matrix
                              preferred_element_type=jnp.float32).astype(jnp.bfloat16)
            gates = gates + jnp.dot(shifted, wh_ref[ky],
                                    preferred_element_type=jnp.float32)

        # All four gates use sigmoid per the reference module (cc_g included).
        s = jax.nn.sigmoid(gates)                        # gate math stays f32 (v5e-friendly)
        i_g = s[:, 0 * Lh:1 * Lh]
        f_g = s[:, 1 * Lh:2 * Lh]
        o_g = s[:, 2 * Lh:3 * Lh]
        g_g = s[:, 3 * Lh:4 * Lh]

        c_next = f_g * c_ref[...] + i_g * g_g
        h_next = o_g * jnp.tanh(c_next)
        c_ref[...] = c_next
        h_ref[...] = h_next
        o_ref[...] = h_next                              # lane-dense (16, 256) store

    return kernel


def convlstm_recurrent(gates_x, wh_big, smat, *, T, B, Hp, Wp, Cout):
    """gates_x: (T*B*Hp, 4*Wp*Cout) bf16; wh_big: (3, Wp*Cout, 4*Wp*Cout) bf16;
       smat: (3, B*Hp, B*Hp) bf16 -> h_seq: (T*B*Hp, Wp*Cout) f32."""
    R = B * Hp
    Lh = Wp * Cout
    Lg = 4 * Lh
    return pl.pallas_call(
        _make_recurrent_kernel(Hp, Wp, Cout),
        out_shape=jax.ShapeDtypeStruct((T * R, Lh), jnp.float32),
        grid=(T,),
        in_specs=[
            pl.BlockSpec((R, Lg), lambda t: (t, 0)),          # per-step gates_x block (bf16)
            pl.BlockSpec((3, Lh, Lg), lambda t: (0, 0, 0)),   # resident weight (loaded once)
            pl.BlockSpec((3, R, R), lambda t: (0, 0, 0)),     # resident dy-shift matrices
        ],
        out_specs=pl.BlockSpec((R, Lh), lambda t: (t, 0)),
        scratch_shapes=[
            pltpu.VMEM((R, Lh), jnp.float32),   # h state (lane-dense)
            pltpu.VMEM((R, Lh), jnp.float32),   # c state (lane-dense)
        ],
        # t carries h/c state across grid steps -> must stay sequential on one core.
        compiler_params=pltpu.CompilerParams(
            dimension_semantics=("arbitrary",),
            vmem_limit_bytes=32 * 1024 * 1024),
    )(gates_x, wh_big, smat)


# ---------------------------------------------------------------------------
# Down.forward
# ---------------------------------------------------------------------------
def down_forward(x, w_oihw):
    """x: (B, T, Cin, H, W) float32; w_oihw: (4*Cout, Cin+Cout, 3, 3) PyTorch Conv2d weight.
    Returns (B, T, Cout, H//2, W//2) float32."""
    B, T, Cin, H, W = x.shape
    Cout = w_oihw.shape[0] // 4
    assert H % 2 == 0 and W % 2 == 0, "2x2/2 max-pool assumes even H, W"
    Hp, Wp = H // 2, W // 2
    R = B * Hp
    Lh = Wp * Cout
    # TODO(synk): the reference forward also prints debug info (sizes); omitted (no compute).

    # ---- MaxPool 2x2 stride 2 + layout prep in plain XLA (trivially memory-bound) ----
    pooled = x.reshape(B, T, Cin, Hp, 2, Wp, 2).max(axis=(4, 6))          # (B,T,Cin,Hp,Wp)
    xcl = jnp.transpose(pooled, (1, 0, 3, 4, 2))                           # (T,B,Hp,Wp,Cin)
    xpad = jnp.pad(xcl, ((0, 0), (0, 0), (1, 1), (0, 0), (0, 0)))          # zero-pad y
    taps = [xpad[:, :, ky:ky + Hp].reshape(T, B, Hp, Wp * Cin) for ky in range(3)]
    x_lhs = jnp.concatenate(taps, axis=-1).reshape(T * B * Hp, 3 * Wp * Cin)
    x_lhs = x_lhs.astype(jnp.bfloat16)                                     # (T*B*Hp, 3*Wp*Cin)

    # ---- Weights: split x/h parts; fold the dx taps into block-banded matrices ----
    w_hwio = jnp.transpose(w_oihw, (2, 3, 1, 0))                           # (3,3,Cin+Cout,4*Cout)
    wx = w_hwio[:, :, :Cin, :].reshape(3, 3, Cin, 4, Cout)                 # (ky,kx,ci,g,co)
    wh = w_hwio[:, :, Cin:, :].reshape(3, 3, Cout, 4, Cout)

    kxs = jnp.arange(3)[:, None, None]
    xi = jnp.arange(Wp)[None, :, None]
    xo = jnp.arange(Wp)[None, None, :]
    ind = (xo == xi + 1 - kxs).astype(jnp.float32)                         # input xi feeds output xo via tap kx
    # rows ordered (ky, xi, ci), cols ordered (gate, xo, co)
    wx_big = jnp.einsum('kio,ykcgd->yicgod', ind, wx).reshape(3 * Wp * Cin, 4 * Lh)
    wh_big = jnp.einsum('kio,ykcgd->yicgod', ind, wh).reshape(3, Wp * Cout, 4 * Lh)
    wx_big = wx_big.astype(jnp.bfloat16)
    wh_big = wh_big.astype(jnp.bfloat16)

    # dy shift-selection matrices (0/1), band = Hp rows per image, validity folded in.
    rr = jnp.arange(R)[:, None]
    cc = jnp.arange(R)[None, :]
    smat = jnp.stack(
        [((cc == rr + d) & ((rr % Hp) + d >= 0) & ((rr % Hp) + d < Hp)) for d in (-1, 0, 1)]
    ).astype(jnp.bfloat16)                                                 # (3, R, R)

    gates_x = conv_gates_x(x_lhs, wx_big)                                  # (T*R, 4*Lh) bf16
    h_seq = convlstm_recurrent(gates_x, wh_big, smat,
                               T=T, B=B, Hp=Hp, Wp=Wp, Cout=Cout)          # (T*R, Lh) f32

    out = h_seq.reshape(T, B, Hp, Wp, Cout)
    return jnp.transpose(out, (1, 0, 4, 2, 3))                             # (B, T, Cout, Hp, Wp)


# ---------------------------------------------------------------------------
# Pure-JAX reference (mirrors the PyTorch module) for a correctness check.
# ---------------------------------------------------------------------------
def down_reference(x, w_oihw):
    B, T, C, H, W = x.shape
    Cout = w_oihw.shape[0] // 4
    x2 = x.reshape(B * T, C, H, W)
    pooled = jax.lax.reduce_window(x2, -jnp.inf, jax.lax.max,
                                   (1, 1, 2, 2), (1, 1, 2, 2), 'VALID')
    pooled = pooled.reshape(B, T, C, H // 2, W // 2)
    h = jnp.zeros((B, Cout, H // 2, W // 2), jnp.float32)
    c = jnp.zeros_like(h)
    outs = []
    for t in range(T):
        comb = jnp.concatenate([pooled[:, t], h], axis=1)
        g = jax.lax.conv_general_dilated(comb, w_oihw, (1, 1), ((1, 1), (1, 1)),
                                         dimension_numbers=('NCHW', 'OIHW', 'NCHW'))
        cc_i, cc_f, cc_o, cc_g = jnp.split(g, 4, axis=1)
        i_ = jax.nn.sigmoid(cc_i)
        f_ = jax.nn.sigmoid(cc_f)
        o_ = jax.nn.sigmoid(cc_o)
        g_ = jax.nn.sigmoid(cc_g)
        c = f_ * c + i_ * g_
        h = o_ * jnp.tanh(c)
        outs.append(h)
    return jnp.stack(outs, axis=1)


if __name__ == "__main__":
    B, T, C, H, W = 2, 4, 4, 16, 16   # Down(inc=4, outc=32)
    OUTC = 32
    key = jax.random.PRNGKey(0)
    kx_, kw_ = jax.random.split(key)
    x = jax.random.normal(kx_, (B, T, C, H, W), dtype=jnp.float32)
    # Deterministic synthetic Conv2d weight: (4*outc, inc+outc, 3, 3), bias=False.
    w = jax.random.normal(kw_, (4 * OUTC, C + OUTC, 3, 3), dtype=jnp.float32) * 0.1

    out = jax.jit(down_forward)(x, w)
    out = jax.block_until_ready(out)

    ref = down_reference(x, w)
    assert out.shape == (B, T, OUTC, H // 2, W // 2), out.shape
    max_err = float(jnp.max(jnp.abs(out - ref)))
    # bf16 matmul operands + bf16 gates_x intermediate -> loosened tolerance.
    assert jnp.allclose(out, ref, atol=2e-2, rtol=2e-2), max_err
    print("KERNEL_OK")
</pallas_src>

<mosaic_0001>
module attributes {stable_mosaic.version = 11 : i64} {
  func.func @_prepass_kernel(%arg0: i32, %arg1: memref<64x96xbf16, #tpu.memory_space<vmem>>, %arg2: memref<96x1024xbf16, #tpu.memory_space<vmem>>, %arg3: memref<64x1024xbf16, #tpu.memory_space<vmem>>) attributes {dimension_semantics = [#tpu.dimension_semantics<arbitrary>], iteration_bounds = array<i64: 1>, scalar_prefetch = 0 : i64, scratch_operands = 0 : i64, tpu.core_type = #tpu.core_type<tc>, window_params = [{pipeline_mode = #tpu.pipeline_mode<synchronous>, transform_indices = @transform_0, window_bounds = array<i64: 64, 96>}, {pipeline_mode = #tpu.pipeline_mode<synchronous>, transform_indices = @transform_1, window_bounds = array<i64: 96, 1024>}, {pipeline_mode = #tpu.pipeline_mode<synchronous>, transform_indices = @transform_2, window_bounds = array<i64: 64, 1024>}]} {
    %c0 = arith.constant 0 : index
    %c0_0 = arith.constant 0 : index
    %0 = vector.load %arg1[%c0, %c0_0] : memref<64x96xbf16, #tpu.memory_space<vmem>>, vector<64x96xbf16>
    %c0_1 = arith.constant 0 : index
    %c0_2 = arith.constant 0 : index
    %1 = vector.load %arg2[%c0_1, %c0_2] : memref<96x1024xbf16, #tpu.memory_space<vmem>>, vector<96x1024xbf16>
    %cst = arith.constant dense<0.000000e+00> : vector<64x1024xf32>
    %2 = tpu.matmul %0, %1, %cst {dimension_numbers = #tpu.dot_dimension_numbers<[1], [0], [0], [1], [0, 0, 1, 1], [], []>} : vector<64x96xbf16>, vector<96x1024xbf16>, vector<64x1024xf32> -> vector<64x1024xf32>
    %3 = arith.truncf %2 : vector<64x1024xf32> to vector<64x1024xbf16>
    %c0_3 = arith.constant 0 : index
    %c0_4 = arith.constant 0 : index
    %4 = vector.load %arg3[%c0_3, %c0_4] : memref<64x1024xbf16, #tpu.memory_space<vmem>>, vector<64x1024xbf16>
    tpu.vector_store %arg3[%c0_3, %c0_4], %3 {strides = array<i32>} : memref<64x1024xbf16, #tpu.memory_space<vmem>>, vector<64x1024xbf16>,
    return
  }
  func.func @transform_0(%arg0: i32) -> (i32, i32) {
    %c0_i32 = arith.constant 0 : i32
    %c0_i32_0 = arith.constant 0 : i32
    %c0_i32_1 = arith.constant 0 : i32
    return %c0_i32, %c0_i32_0 : i32, i32
  }
  func.func @transform_1(%arg0: i32) -> (i32, i32) {
    %c0_i32 = arith.constant 0 : i32
    %c0_i32_0 = arith.constant 0 : i32
    %c0_i32_1 = arith.constant 0 : i32
    return %c0_i32, %c0_i32_0 : i32, i32
  }
  func.func @transform_2(%arg0: i32) -> (i32, i32) {
    %c0_i32 = arith.constant 0 : i32
    %c0_i32_0 = arith.constant 0 : i32
    %c0_i32_1 = arith.constant 0 : i32
    return %c0_i32, %c0_i32_0 : i32, i32
  }
}

module attributes {stable_mosaic.version = 11 : i64} {
  func.func @kernel(%arg0: i32, %arg1: memref<16x1024xbf16, #tpu.memory_space<vmem>>, %arg2: memref<3x256x1024xbf16, #tpu.memory_space<vmem>>, %arg3: memref<3x16x16xbf16, #tpu.memory_space<vmem>>, %arg4: memref<16x256xf32, #tpu.memory_space<vmem>>, %arg5: memref<16x256xf32, #tpu.memory_space<vmem>>, %arg6: memref<16x256xf32, #tpu.memory_space<vmem>>) attributes {dimension_semantics = [#tpu.dimension_semantics<arbitrary>], iteration_bounds = array<i64: 4>, scalar_prefetch = 0 : i64, scratch_operands = 2 : i64, tpu.core_type = #tpu.core_type<tc>, window_params = [{transform_indices = @transform_0, window_bounds = array<i64: 16, 1024>}, {pipeline_mode = #tpu.pipeline_mode<synchronous>, transform_indices = @transform_1, window_bounds = array<i64: 3, 256, 1024>}, {pipeline_mode = #tpu.pipeline_mode<synchronous>, transform_indices = @transform_2, window_bounds = array<i64: 3, 16, 16>}, {transform_indices = @transform_3, window_bounds = array<i64: 16, 256>}]} {
    %c0_i32 = arith.constant 0 : i32
    %0 = arith.cmpi eq, %arg0, %c0_i32 : i32
    %1 = arith.extui %0 : i1 to i32
    %c0_i32_0 = arith.constant 0 : i32
    %2 = arith.cmpi ne, %1, %c0_i32_0 : i32
    scf.if %2 {
      %cst_34 = arith.constant 0.000000e+00 : f32
      %49 = vector.broadcast %cst_34 : f32 to vector<16x256xf32>
      %c0_35 = arith.constant 0 : index
      %c0_36 = arith.constant 0 : index
      %50 = vector.load %arg5[%c0_35, %c0_36] : memref<16x256xf32, #tpu.memory_space<vmem>>, vector<16x256xf32>
      tpu.vector_store %arg5[%c0_35, %c0_36], %49 {strides = array<i32>} : memref<16x256xf32, #tpu.memory_space<vmem>>, vector<16x256xf32>,
      %cst_37 = arith.constant 0.000000e+00 : f32
      %51 = vector.broadcast %cst_37 : f32 to vector<16x256xf32>
      %c0_38 = arith.constant 0 : index
      %c0_39 = arith.constant 0 : index
      %52 = vector.load %arg6[%c0_38, %c0_39] : memref<16x256xf32, #tpu.memory_space<vmem>>, vector<16x256xf32>
      tpu.vector_store %arg6[%c0_38, %c0_39], %51 {strides = array<i32>} : memref<16x256xf32, #tpu.memory_space<vmem>>, vector<16x256xf32>,
    } else {
    }
    %c0 = arith.constant 0 : index
    %c0_1 = arith.constant 0 : index
    %3 = vector.load %arg5[%c0, %c0_1] : memref<16x256xf32, #tpu.memory_space<vmem>>, vector<16x256xf32>
    %4 = arith.truncf %3 : vector<16x256xf32> to vector<16x256xbf16>
    %c0_2 = arith.constant 0 : index
    %c0_3 = arith.constant 0 : index
    %5 = vector.load %arg1[%c0_2, %c0_3] : memref<16x1024xbf16, #tpu.memory_space<vmem>>, vector<16x1024xbf16>
    %6 = arith.extf %5 : vector<16x1024xbf16> to vector<16x1024xf32>
    %c0_4 = arith.constant 0 : index
    %c0_5 = arith.constant 0 : index
    %c0_6 = arith.constant 0 : index
    %7 = vector.load %arg3[%c0_4, %c0_5, %c0_6] : memref<3x16x16xbf16, #tpu.memory_space<vmem>>, vector<1x16x16xbf16>
    %8 = vector.shape_cast %7 : vector<1x16x16xbf16> to vector<16x16xbf16>
    %cst = arith.constant dense<0.000000e+00> : vector<16x256xf32>
    %9 = tpu.matmul %8, %4, %cst {dimension_numbers = #tpu.dot_dimension_numbers<[1], [0], [0], [1], [0, 0, 1, 1], [], []>} : vector<16x16xbf16>, vector<16x256xbf16>, vector<16x256xf32> -> vector<16x256xf32>
    %10 = arith.truncf %9 : vector<16x256xf32> to vector<16x256xbf16>
    %c0_7 = arith.constant 0 : index
    %c0_8 = arith.constant 0 : index
    %c0_9 = arith.constant 0 : index
    %11 = vector.load %arg2[%c0_7, %c0_8, %c0_9] : memref<3x256x1024xbf16, #tpu.memory_space<vmem>>, vector<1x256x1024xbf16>
    %12 = vector.shape_cast %11 : vector<1x256x1024xbf16> to vector<256x1024xbf16>
    %cst_10 = arith.constant dense<0.000000e+00> : vector<16x1024xf32>
    %13 = tpu.matmul %10, %12, %cst_10 {dimension_numbers = #tpu.dot_dimension_numbers<[1], [0], [0], [1], [0, 0, 1, 1], [], []>} : vector<16x256xbf16>, vector<256x1024xbf16>, vector<16x1024xf32> -> vector<16x1024xf32>
    %14 = arith.addf %6, %13 : vector<16x1024xf32>
    %c1 = arith.constant 1 : index
    %c0_11 = arith.constant 0 : index
    %c0_12 = arith.constant 0 : index
    %15 = vector.load %arg3[%c1, %c0_11, %c0_12] : memref<3x16x16xbf16, #tpu.memory_space<vmem>>, vector<1x16x16xbf16>
    %16 = vector.shape_cast %15 : vector<1x16x16xbf16> to vector<16x16xbf16>
    %cst_13 = arith.constant dense<0.000000e+00> : vector<16x256xf32>
    %17 = tpu.matmul %16, %4, %cst_13 {dimension_numbers = #tpu.dot_dimension_numbers<[1], [0], [0], [1], [0, 0, 1, 1], [], []>} : vector<16x16xbf16>, vector<16x256xbf16>, vector<16x256xf32> -> vector<16x256xf32>
    %18 = arith.truncf %17 : vector<16x256xf32> to vector<16x256xbf16>
    %c1_14 = arith.constant 1 : index
    %c0_15 = arith.constant 0 : index
    %c0_16 = arith.constant 0 : index
    %19 = vector.load %arg2[%c1_14, %c0_15, %c0_16] : memref<3x256x1024xbf16, #tpu.memory_space<vmem>>, vector<1x256x1024xbf16>
    %20 = vector.shape_cast %19 : vector<1x256x1024xbf16> to vector<256x1024xbf16>
    %cst_17 = arith.constant dense<0.000000e+00> : vector<16x1024xf32>
    %21 = tpu.matmul %18, %20, %cst_17 {dimension_numbers = #tpu.dot_dimension_numbers<[1], [0], [0], [1], [0, 0, 1, 1], [], []>} : vector<16x256xbf16>, vector<256x1024xbf16>, vector<16x1024xf32> -> vector<16x1024xf32>
    %22 = arith.addf %14, %21 : vector<16x1024xf32>
    %c2 = arith.constant 2 : index
    %c0_18 = arith.constant 0 : index
    %c0_19 = arith.constant 0 : index
    %23 = vector.load %arg3[%c2, %c0_18, %c0_19] : memref<3x16x16xbf16, #tpu.memory_space<vmem>>, vector<1x16x16xbf16>
    %24 = vector.shape_cast %23 : vector<1x16x16xbf16> to vector<16x16xbf16>
    %cst_20 = arith.constant dense<0.000000e+00> : vector<16x256xf32>
    %25 = tpu.matmul %24, %4, %cst_20 {dimension_numbers = #tpu.dot_dimension_numbers<[1], [0], [0], [1], [0, 0, 1, 1], [], []>} : vector<16x16xbf16>, vector<16x256xbf16>, vector<16x256xf32> -> vector<16x256xf32>
    %26 = arith.truncf %25 : vector<16x256xf32> to vector<16x256xbf16>
    %c2_21 = arith.constant 2 : index
    %c0_22 = arith.constant 0 : index
    %c0_23 = arith.constant 0 : index
    %27 = vector.load %arg2[%c2_21, %c0_22, %c0_23] : memref<3x256x1024xbf16, #tpu.memory_space<vmem>>, vector<1x256x1024xbf16>
    %28 = vector.shape_cast %27 : vector<1x256x1024xbf16> to vector<256x1024xbf16>
    %cst_24 = arith.constant dense<0.000000e+00> : vector<16x1024xf32>
    %29 = tpu.matmul %26, %28, %cst_24 {dimension_numbers = #tpu.dot_dimension_numbers<[1], [0], [0], [1], [0, 0, 1, 1], [], []>} : vector<16x256xbf16>, vector<256x1024xbf16>, vector<16x1024xf32> -> vector<16x1024xf32>
    %30 = arith.addf %22, %29 : vector<16x1024xf32>
    %31 = arith.negf %30 : vector<16x1024xf32>
    %32 = math.exp %31 : vector<16x1024xf32>
    %cst_25 = arith.constant 1.000000e+00 : f32
    %33 = vector.broadcast %cst_25 : f32 to vector<16x1024xf32>
    %34 = arith.addf %33, %32 : vector<16x1024xf32>
    %35 = arith.divf %33, %34 : vector<16x1024xf32>
    %36 = vector.extract_strided_slice %35 {offsets = [0, 0], sizes = [16, 256], strides = [1, 1]} : vector<16x1024xf32> to vector<16x256xf32>
    %37 = vector.extract_strided_slice %35 {offsets = [0, 256], sizes = [16, 256], strides = [1, 1]} : vector<16x1024xf32> to vector<16x256xf32>
    %38 = vector.extract_strided_slice %35 {offsets = [0, 512], sizes = [16, 256], strides = [1, 1]} : vector<16x1024xf32> to vector<16x256xf32>
    %39 = vector.extract_strided_slice %35 {offsets = [0, 768], sizes = [16, 256], strides = [1, 1]} : vector<16x1024xf32> to vector<16x256xf32>
    %c0_26 = arith.constant 0 : index
    %c0_27 = arith.constant 0 : index
    %40 = vector.load %arg6[%c0_26, %c0_27] : memref<16x256xf32, #tpu.memory_space<vmem>>, vector<16x256xf32>
    %41 = arith.mulf %37, %40 : vector<16x256xf32>
    %42 = arith.mulf %36, %39 : vector<16x256xf32>
    %43 = arith.addf %41, %42 : vector<16x256xf32>
    %44 = math.tanh %43 : vector<16x256xf32>
    %45 = arith.mulf %38, %44 : vector<16x256xf32>
    %c0_28 = arith.constant 0 : index
    %c0_29 = arith.constant 0 : index
    %46 = vector.load %arg6[%c0_28, %c0_29] : memref<16x256xf32, #tpu.memory_space<vmem>>, vector<16x256xf32>
    tpu.vector_store %arg6[%c0_28, %c0_29], %43 {strides = array<i32>} : memref<16x256xf32, #tpu.memory_space<vmem>>, vector<16x256xf32>,
    %c0_30 = arith.constant 0 : index
    %c0_31 = arith.constant 0 : index
    %47 = vector.load %arg5[%c0_30, %c0_31] : memref<16x256xf32, #tpu.memory_space<vmem>>, vector<16x256xf32>
    tpu.vector_store %arg5[%c0_30, %c0_31], %45 {strides = array<i32>} : memref<16x256xf32, #tpu.memory_space<vmem>>, vector<16x256xf32>,
    %c0_32 = arith.constant 0 : index
    %c0_33 = arith.constant 0 : index
    %48 = vector.load %arg4[%c0_32, %c0_33] : memref<16x256xf32, #tpu.memory_space<vmem>>, vector<16x256xf32>
    tpu.vector_store %arg4[%c0_32, %c0_33], %45 {strides = array<i32>} : memref<16x256xf32, #tpu.memory_space<vmem>>, vector<16x256xf32>,
    return
  }
  func.func @transform_0(%arg0: i32) -> (i32, i32) {
    %c0_i32 = arith.constant 0 : i32
    %c0_i32_0 = arith.constant 0 : i32
    return %arg0, %c0_i32 : i32, i32
  }
  func.func @transform_1(%arg0: i32) -> (i32, i32, i32) {
    %c0_i32 = arith.constant 0 : i32
    %c0_i32_0 = arith.constant 0 : i32
    %c0_i32_1 = arith.constant 0 : i32
    %c0_i32_2 = arith.constant 0 : i32
    return %c0_i32, %c0_i32_0, %c0_i32_1 : i32, i32, i32
  }
  func.func @transform_2(%arg0: i32) -> (i32, i32, i32) {
    %c0_i32 = arith.constant 0 : i32
    %c0_i32_0 = arith.constant 0 : i32
    %c0_i32_1 = arith.constant 0 : i32
    %c0_i32_2 = arith.constant 0 : i32
    return %c0_i32, %c0_i32_0, %c0_i32_1 : i32, i32, i32
  }
  func.func @transform_3(%arg0: i32) -> (i32, i32) {
    %c0_i32 = arith.constant 0 : i32
    %c0_i32_0 = arith.constant 0 : i32
    return %arg0, %c0_i32 : i32, i32
  }
}

</mosaic_0001>

<bundles_post_ra>
// kernel: down_forward.2
= control target key start
LH: loop header
LB: loop body
LE: loop exit
PB: predicated region body
PF: predicated region fallthrough
CT: control target
= control target key end

     0   :  { %v998_v3 = vmov 0   ;;  %vm328_vm0 = vcmask 785408   ;;  %s1310_s1 = inlined_call_operand.vmem [shape: bf16[96,1024], index: 1, kind: input, shape index: {}]   ;;  %s1311_s0 = inlined_call_operand.vmem [shape: bf16[64,96], index: 0, kind: input, shape index: {}]   ;;  %s1312_s2 = inlined_call_operand.vmem [shape: bf16[64,1024], index: 2, kind: output, shape index: {}]  }
   0x1   :  { %v60_v0 = vld [vmem:[%s1310_s1 + $0x140] sm:$0xff]  ;;  %v61_v2 = vld [vmem:[%s1310_s1 + $0x148] sm:$0xff]  ;;  %373 = vmatprep.mubr.bf16.mxu0 %v998_v3  ;;  %446 = vmatprep.mubr.bf16.mxu1 %v998_v3  ;;  %v62_v47 = vld [vmem:[%s1310_s1 + $0x150] sm:$0xff] }
   0x2   :  { %v64_v1 = vld [vmem:[%s1310_s1 + $0x160] sm:$0xff]  ;;  %v65_v5 = vld [vmem:[%s1310_s1 + $0x168] sm:$0xff]  ;;  %v66_v48 = vld [vmem:[%s1310_s1 + $0x170] sm:$0xff] }
   0x3   :  { %v906_v4 = vcombine.high %v60_v0, %v64_v1  ;;  %v905_v6 = vcombine.low %v60_v0, %v64_v1  ;;  %v52_v7 = vld [vmem:[%s1310_s1 + $0x100] sm:$0xff]  ;;  %v908_v9 = vcombine.high %v61_v2, %v65_v5  ;;  %v907_v10 = vcombine.low %v61_v2, %v65_v5  ;;  %v53_v12 = vld [vmem:[%s1310_s1 + $0x108] sm:$0xff]  ;;  %v63_v49 = vld [vmem:[%s1310_s1 + $0x158] sm:$0xff] }
   0x4   :  { %v56_v8 = vld [vmem:[%s1310_s1 + $0x120] sm:$0xff]  ;;  %v57_v13 = vld [vmem:[%s1310_s1 + $0x128] sm:$0xff]  ;;  %v67_v50 = vld [vmem:[%s1310_s1 + $0x178] sm:$0xff]  ;;  %v910_v53 = vcombine.high %v62_v47, %v66_v48  ;;  %v909_v60 = vcombine.low %v62_v47, %v66_v48 }
   0x5   :  { %v898_v11 = vcombine.high %v52_v7, %v56_v8  ;;  %v44_v14 = vld [vmem:[%s1310_s1 + $0xc0] sm:$0xff]  ;;  %345 = vmatprep.subr.bf16.mxu0 %v906_v4  ;;  %v900_v15 = vcombine.high %v53_v12, %v57_v13  ;;  %v45_v17 = vld [vmem:[%s1310_s1 + $0xc8] sm:$0xff]  ;;  %418 = vmatprep.subr.bf16.mxu1 %v908_v9  ;;  %v897_v19 = vcombine.low %v52_v7, %v56_v8  ;;  %v54_v55 = vld [vmem:[%s1310_s1 + $0x110] sm:$0xff] }
   0x6   :  { %v48_v16 = vld [vmem:[%s1310_s1 + $0xe0] sm:$0xff]  ;;  %v49_v18 = vld [vmem:[%s1310_s1 + $0xe8] sm:$0xff]  ;;  %346 = vmatpush1.bf16.msra.mxu0 %v905_v6  ;;  %419 = vmatpush1.bf16.msra.mxu1 %v907_v10  ;;  %v899_v20 = vcombine.low %v53_v12, %v57_v13  ;;  %v912_v54 = vcombine.high %v63_v49, %v67_v50  ;;  %v58_v56 = vld [vmem:[%s1310_s1 + $0x130] sm:$0xff]  ;;  %v911_v61 = vcombine.low %v63_v49, %v67_v50 }
   0x7   :  { %347 = vmatprep.subr.bf16.mxu0 %v898_v11  ;;  %v890_v21 = vcombine.high %v44_v14, %v48_v16  ;;  %420 = vmatprep.subr.bf16.mxu1 %v900_v15  ;;  %v892_v22 = vcombine.high %v45_v17, %v49_v18  ;;  %v36_v23 = vld [vmem:[%s1310_s1 + $0x80] sm:$0xff]  ;;  %v37_v25 = vld [vmem:[%s1310_s1 + $0x88] sm:$0xff]  ;;  %v889_v27 = vcombine.low %v44_v14, %v48_v16  ;;  %v55_v58 = vld [vmem:[%s1310_s1 + $0x118] sm:$0xff] }
   0x8   :  { %v40_v24 = vld [vmem:[%s1310_s1 + $0xa0] sm:$0xff]  ;;  %v41_v26 = vld [vmem:[%s1310_s1 + $0xa8] sm:$0xff]  ;;  %v891_v28 = vcombine.low %v45_v17, %v49_v18  ;;  %v59_v59 = vld [vmem:[%s1310_s1 + $0x138] sm:$0xff]  ;;  %v902_v62 = vcombine.high %v54_v55, %v58_v56  ;;  %v901_v5 = vcombine.low %v54_v55, %v58_v56 }
   0x9   :  { %v882_v29 = vcombine.high %v36_v23, %v40_v24  ;;  %v884_v30 = vcombine.high %v37_v25, %v41_v26  ;;  %v28_v31 = vld [vmem:[%s1310_s1 + $0x40] sm:$0xff]  ;;  %v29_v33 = vld [vmem:[%s1310_s1 + $0x48] sm:$0xff]  ;;  %v881_v35 = vcombine.low %v36_v23, %v40_v24  ;;  %v883_v36 = vcombine.low %v37_v25, %v41_v26  ;;  %v46_v0 = vld [vmem:[%s1310_s1 + $0xd0] sm:$0xff] }
   0xa   :  { %348 = vmatpush1.bf16.msra.mxu0 %v897_v19  ;;  %421 = vmatpush1.bf16.msra.mxu1 %v899_v20  ;;  %v32_v32 = vld [vmem:[%s1310_s1 + $0x60] sm:$0xff]  ;;  %v33_v34 = vld [vmem:[%s1310_s1 + $0x68] sm:$0xff]  ;;  %v904_v63 = vcombine.high %v55_v58, %v59_v59  ;;  %v50_v1 = vld [vmem:[%s1310_s1 + $0xf0] sm:$0xff]  ;;  %v903_v6 = vcombine.low %v55_v58, %v59_v59 }
   0xb   :  { %349 = vmatprep.subr.bf16.mxu0 %v890_v21  ;;  %422 = vmatprep.subr.bf16.mxu1 %v892_v22  ;;  %v874_v37 = vcombine.high %v28_v31, %v32_v32  ;;  %v20_v38 = vld [vmem:[%s1310_s1] sm:$0xff]  ;;  %v876_v39 = vcombine.high %v29_v33, %v33_v34  ;;  %v21_v41 = vld [vmem:[%s1310_s1 + $0x8] sm:$0xff]  ;;  %v873_v43 = vcombine.low %v28_v31, %v32_v32  ;;  %v47_v2 = vld [vmem:[%s1310_s1 + $0xd8] sm:$0xff] }
   0xc   :  { %v24_v40 = vld [vmem:[%s1310_s1 + $0x20] sm:$0xff]  ;;  %v25_v42 = vld [vmem:[%s1310_s1 + $0x28] sm:$0xff]  ;;  %v875_v44 = vcombine.low %v29_v33, %v33_v34  ;;  %v51_v4 = vld [vmem:[%s1310_s1 + $0xf8] sm:$0xff]  ;;  %v894_v7 = vcombine.high %v46_v0, %v50_v1  ;;  %v893_v12 = vcombine.low %v46_v0, %v50_v1 }
   0xd   :  { %v866_v45 = vcombine.high %v20_v38, %v24_v40  ;;  %v868_v46 = vcombine.high %v21_v41, %v25_v42  ;;  %v865_v51 = vcombine.low %v20_v38, %v24_v40  ;;  %v867_v52 = vcombine.low %v21_v41, %v25_v42  ;;  %v1109_v57 = vld [vmem:[%s1311_s0] sm:$0xff]   ;;  %v1138_v9 = vld [vmem:[%s1311_s0 + $0x8] sm:$0xff]   ;;  %v38_v10 = vld [vmem:[%s1310_s1 + $0x90] sm:$0xff] }
   0xe   :  { %350 = vmatpush1.bf16.msra.mxu0 %v889_v27  ;;  %423 = vmatpush1.bf16.msra.mxu1 %v891_v28  ;;  %v896_v8 = vcombine.high %v47_v2, %v51_v4  ;;  %v42_v11 = vld [vmem:[%s1310_s1 + $0xb0] sm:$0xff]  ;;  %v39_v13 = vld [vmem:[%s1310_s1 + $0x98] sm:$0xff]  ;;  %v895_v15 = vcombine.low %v47_v2, %v51_v4 }
   0xf   :  { %351 = vmatprep.subr.bf16.mxu0 %v882_v29  ;;  %424 = vmatprep.subr.bf16.mxu1 %v884_v30  ;;  %v43_v14 = vld [vmem:[%s1310_s1 + $0xb8] sm:$0xff]  ;;  %v886_v16 = vcombine.high %v38_v10, %v42_v11  ;;  %v30_v17 = vld [vmem:[%s1310_s1 + $0x50] sm:$0xff]  ;;  %v885_v22 = vcombine.low %v38_v10, %v42_v11 }
  0x10   :  { %v34_v18 = vld [vmem:[%s1310_s1 + $0x70] sm:$0xff]  ;;  %v888_v19 = vcombine.high %v39_v13, %v43_v14  ;;  %v31_v20 = vld [vmem:[%s1310_s1 + $0x58] sm:$0xff]  ;;  %v887_v23 = vcombine.low %v39_v13, %v43_v14 }
  0x11   :  { %v35_v21 = vld [vmem:[%s1310_s1 + $0x78] sm:$0xff]  ;;  %v878_v24 = vcombine.high %v30_v17, %v34_v18  ;;  %v996_v26 = vld [vmem:[%s1311_s0 + $0x10] sm:$0xff]   ;;  %v877_v31 = vcombine.low %v30_v17, %v34_v18 }
  0x12   :  { %352 = vmatpush1.bf16.msra.mxu0 %v881_v35  ;;  %425 = vmatpush1.bf16.msra.mxu1 %v883_v36  ;;  %v880_v25 = vcombine.high %v31_v20, %v35_v21  ;;  %v22_v27 = vld [vmem:[%s1310_s1 + $0x10] sm:$0xff]  ;;  %v23_v29 = vld [vmem:[%s1310_s1 + $0x18] sm:$0xff]  ;;  %v879_v32 = vcombine.low %v31_v20, %v35_v21 }
  0x13   :  { %353 = vmatprep.subr.bf16.mxu0 %v874_v37  ;;  %426 = vmatprep.subr.bf16.mxu1 %v876_v39  ;;  %v26_v28 = vld [vmem:[%s1310_s1 + $0x30] sm:$0xff]  ;;  %v27_v30 = vld [vmem:[%s1310_s1 + $0x38] sm:$0xff] }
  0x14   :  { %v870_v33 = vcombine.high %v22_v27, %v26_v28  ;;  %v872_v34 = vcombine.high %v23_v29, %v27_v30  ;;  %v869_v35 = vcombine.low %v22_v27, %v26_v28  ;;  %v871_v36 = vcombine.low %v23_v29, %v27_v30  ;;  %v997_v37 = vld [vmem:[%s1311_s0 + $0x18] sm:$0xff]  }
  0x16   :  { %354 = vmatpush1.bf16.msra.mxu0 %v873_v43  ;;  %427 = vmatpush1.bf16.msra.mxu1 %v875_v44 }
  0x17   :  { %355 = vmatprep.subr.bf16.mxu0 %v866_v45  ;;  %428 = vmatprep.subr.bf16.mxu1 %v868_v46 }
  0x1a   :  { %356 = vmatpush1.bf16.msra.mxu0 %v865_v51  ;;  %429 = vmatpush1.bf16.msra.mxu1 %v867_v52 }
  0x1b   :  { %491 = vmatprep.subr.bf16.mxu0 %v910_v53  ;;  %564 = vmatprep.subr.bf16.mxu1 %v912_v54 }
  0x1d   :  { %913 = vmatmul.mubr.msk.bf16.vlgmr.msra.gmra.mxu0 %vm328_vm0, %v1109_v57  ;;  %917 = vmatmul.mubr.msk.bf16.vlgmr.msra.gmra.mxu1 %vm328_vm0, %v1109_v57 }
  0x1e   :  { %492 = vmatpush1.bf16.msra.mxu0 %v909_v60  ;;  %565 = vmatpush1.bf16.msra.mxu1 %v911_v61 }
  0x1f   :  { %493 = vmatprep.subr.bf16.mxu0 %v902_v62  ;;  %566 = vmatprep.subr.bf16.mxu1 %v904_v63 }
  0x20   :  { %383 = vmatprep.mubr.bf16.mxu0 %v998_v3  ;;  %456 = vmatprep.mubr.bf16.mxu1 %v998_v3 }
  0x22   :  { %494 = vmatpush1.bf16.msra.mxu0 %v901_v5  ;;  %567 = vmatpush1.bf16.msra.mxu1 %v903_v6 }
  0x23   :  { %495 = vmatprep.subr.bf16.mxu0 %v894_v7  ;;  %568 = vmatprep.subr.bf16.mxu1 %v896_v8 }
  0x25   :  { %914 = vmatmul.mubr.msk.bf16.gmra.mxu0 %vm328_vm0, %v1138_v9  ;;  %918 = vmatmul.mubr.msk.bf16.gmra.mxu1 %vm328_vm0, %v1138_v9 }
  0x26   :  { %496 = vmatpush1.bf16.msra.mxu0 %v893_v12  ;;  %569 = vmatpush1.bf16.msra.mxu1 %v895_v15 }
  0x27   :  { %393 = vmatprep.mubr.bf16.mxu0 %v998_v3  ;;  %466 = vmatprep.mubr.bf16.mxu1 %v998_v3 }
  0x28   :  { %497 = vmatprep.subr.bf16.mxu0 %v886_v16  ;;  %570 = vmatprep.subr.bf16.mxu1 %v888_v19 }
  0x2a   :  { %498 = vmatpush1.bf16.msra.mxu0 %v885_v22  ;;  %571 = vmatpush1.bf16.msra.mxu1 %v887_v23 }
  0x2b   :  { %499 = vmatprep.subr.bf16.mxu0 %v878_v24  ;;  %572 = vmatprep.subr.bf16.mxu1 %v880_v25 }
  0x2d   :  { %915 = vmatmul.mubr.msk.bf16.gmra.mxu0 %vm328_vm0, %v996_v26  ;;  %919 = vmatmul.mubr.msk.bf16.gmra.mxu1 %vm328_vm0, %v996_v26 }
  0x2e   :  { %403 = vmatprep.mubr.bf16.mxu0 %v998_v3  ;;  %476 = vmatprep.mubr.bf16.mxu1 %v998_v3 }
  0x2f   :  { %500 = vmatpush1.bf16.msra.mxu0 %v877_v31  ;;  %573 = vmatpush1.bf16.msra.mxu1 %v879_v32 }
  0x30   :  { %501 = vmatprep.subr.bf16.mxu0 %v870_v33  ;;  %574 = vmatprep.subr.bf16.mxu1 %v872_v34 }
  0x33   :  { %502 = vmatpush1.bf16.msra.mxu0 %v869_v35  ;;  %575 = vmatpush1.bf16.msra.mxu1 %v871_v36 }
  0x35   :  { %916 = vmatmul.mubr.msk.bf16.gmra.mxu0 %vm328_vm0, %v997_v37  ;;  %920 = vmatmul.mubr.msk.bf16.gmra.mxu1 %vm328_vm0, %v997_v37 }
  0x36   :  { %519 = vmatprep.mubr.bf16.mxu0 %v998_v3  ;;  %592 = vmatprep.mubr.bf16.mxu1 %v998_v3 }
  0x3d   :  { %921 = vmatmul.mubr.msk.bf16.vlgmr.msra.gmra.mxu0 %vm328_vm0, %v1109_v57  ;;  %925 = vmatmul.mubr.msk.bf16.vlgmr.msra.gmra.mxu1 %vm328_vm0, %v1109_v57 }
  0x3e   :  { %529 = vmatprep.mubr.bf16.mxu0 %v998_v3  ;;  %602 = vmatprep.mubr.bf16.mxu1 %v998_v3 }
  0x45   :  { %922 = vmatmul.mubr.msk.bf16.gmra.mxu0 %vm328_vm0, %v1138_v9  ;;  %926 = vmatmul.mubr.msk.bf16.gmra.mxu1 %vm328_vm0, %v1138_v9 }
  0x46   :  { %539 = vmatprep.mubr.bf16.mxu0 %v998_v3  ;;  %612 = vmatprep.mubr.bf16.mxu1 %v998_v3 }
  0x4d   :  { %923 = vmatmul.mubr.msk.bf16.gmra.mxu0 %vm328_vm0, %v996_v26  ;;  %927 = vmatmul.mubr.msk.bf16.gmra.mxu1 %vm328_vm0, %v996_v26 }
  0x4e   :  { %549 = vmatprep.mubr.bf16.mxu0 %v998_v3  ;;  %622 = vmatprep.mubr.bf16.mxu1 %v998_v3 }
  0x55   :  { %924 = vmatmul.mubr.msk.bf16.gmra.mxu0 %vm328_vm0, %v997_v37  ;;  %928 = vmatmul.mubr.msk.bf16.gmra.mxu1 %vm328_vm0, %v997_v37 }
  0xdd   :  { %v375_v38 = vpop.f32.mrf.mxu0  ;;  %v448_v39 = vpop.f32.mrf.mxu1 }
  0xdf   :  { %v377_v40 = vpop.f32.mrf.mxu0  ;;  %v450_v42 = vpop.f32.mrf.mxu1 }
  0xe0   :  { %v961_v41 = vpack.c.bf16 %v377_v40, %v375_v38  ;;  %v962_v43 = vpack.c.bf16 %v450_v42, %v448_v39 }
  0xe1   :  { %v379_v44 = vpop.f32.mrf.mxu0  ;;  %v452_v45 = vpop.f32.mrf.mxu1 }
  0xe2   :  { %825 = vst [vmem:[%s1312_s2] sm:$0xff] %v961_v41  ;;  %826 = vst [vmem:[%s1312_s2 + $0x8] sm:$0xff] %v962_v43 }
  0xe3   :  { %v381_v3 = vpop.f32.mrf.mxu0  ;;  %v454_v47 = vpop.f32.mrf.mxu1 }
  0xe4   :  { %v965_v46 = vpack.c.bf16 %v381_v3, %v379_v44  ;;  %v966_v48 = vpack.c.bf16 %v454_v47, %v452_v45 }
  0xe5   :  { %v385_v49 = vpop.f32.mrf.mxu0  ;;  %v458_v50 = vpop.f32.mrf.mxu1 }
  0xe6   :  { %829 = vst [vmem:[%s1312_s2 + $0x20] sm:$0xff] %v965_v46  ;;  %830 = vst [vmem:[%s1312_s2 + $0x28] sm:$0xff] %v966_v48 }
  0xe7   :  { %v387_v51 = vpop.f32.mrf.mxu0  ;;  %v460_v53 = vpop.f32.mrf.mxu1 }
  0xe8   :  { %v969_v52 = vpack.c.bf16 %v387_v51, %v385_v49  ;;  %v970_v54 = vpack.c.bf16 %v460_v53, %v458_v50 }
  0xe9   :  { %v389_v55 = vpop.f32.mrf.mxu0  ;;  %v462_v56 = vpop.f32.mrf.mxu1 }
  0xea   :  { %833 = vst [vmem:[%s1312_s2 + $0x40] sm:$0xff] %v969_v52  ;;  %834 = vst [vmem:[%s1312_s2 + $0x48] sm:$0xff] %v970_v54 }
  0xeb   :  { %v391_v57 = vpop.f32.mrf.mxu0  ;;  %v464_v59 = vpop.f32.mrf.mxu1 }
  0xec   :  { %v973_v58 = vpack.c.bf16 %v391_v57, %v389_v55  ;;  %v974_v60 = vpack.c.bf16 %v464_v59, %v462_v56 }
  0xed   :  { %v395_v61 = vpop.f32.mrf.mxu0  ;;  %v468_v62 = vpop.f32.mrf.mxu1 }
  0xee   :  { %837 = vst [vmem:[%s1312_s2 + $0x60] sm:$0xff] %v973_v58  ;;  %838 = vst [vmem:[%s1312_s2 + $0x68] sm:$0xff] %v974_v60 }
  0xef   :  { %v397_v63 = vpop.f32.mrf.mxu0  ;;  %v470_v1 = vpop.f32.mrf.mxu1 }
  0xf0   :  { %v977_v0 = vpack.c.bf16 %v397_v63, %v395_v61  ;;  %v978_v2 = vpack.c.bf16 %v470_v1, %v468_v62 }
  0xf1   :  { %v399_v4 = vpop.f32.mrf.mxu0  ;;  %v472_v5 = vpop.f32.mrf.mxu1 }
  0xf2   :  { %841 = vst [vmem:[%s1312_s2 + $0x80] sm:$0xff] %v977_v0  ;;  %842 = vst [vmem:[%s1312_s2 + $0x88] sm:$0xff] %v978_v2 }
  0xf3   :  { %v401_v6 = vpop.f32.mrf.mxu0  ;;  %v474_v8 = vpop.f32.mrf.mxu1 }
  0xf4   :  { %v981_v7 = vpack.c.bf16 %v401_v6, %v399_v4  ;;  %v982_v9 = vpack.c.bf16 %v474_v8, %v472_v5 }
  0xf5   :  { %v405_v10 = vpop.f32.mrf.mxu0  ;;  %v478_v11 = vpop.f32.mrf.mxu1 }
  0xf6   :  { %845 = vst [vmem:[%s1312_s2 + $0xa0] sm:$0xff] %v981_v7  ;;  %846 = vst [vmem:[%s1312_s2 + $0xa8] sm:$0xff] %v982_v9 }
  0xf7   :  { %v407_v12 = vpop.f32.mrf.mxu0  ;;  %v480_v14 = vpop.f32.mrf.mxu1 }
  0xf8   :  { %v985_v13 = vpack.c.bf16 %v407_v12, %v405_v10  ;;  %v986_v15 = vpack.c.bf16 %v480_v14, %v478_v11 }
  0xf9   :  { %v409_v16 = vpop.f32.mrf.mxu0  ;;  %v482_v17 = vpop.f32.mrf.mxu1 }
  0xfa   :  { %849 = vst [vmem:[%s1312_s2 + $0xc0] sm:$0xff] %v985_v13  ;;  %850 = vst [vmem:[%s1312_s2 + $0xc8] sm:$0xff] %v986_v15 }
  0xfb   :  { %v411_v18 = vpop.f32.mrf.mxu0  ;;  %v484_v20 = vpop.f32.mrf.mxu1 }
  0xfc   :  { %v989_v19 = vpack.c.bf16 %v411_v18, %v409_v16  ;;  %v990_v21 = vpack.c.bf16 %v484_v20, %v482_v17 }
  0xfd   :  { %v521_v22 = vpop.f32.mrf.mxu0  ;;  %v594_v23 = vpop.f32.mrf.mxu1 }
  0xfe   :  { %853 = vst [vmem:[%s1312_s2 + $0xe0] sm:$0xff] %v989_v19  ;;  %854 = vst [vmem:[%s1312_s2 + $0xe8] sm:$0xff] %v990_v21 }
  0xff   :  { %v523_v24 = vpop.f32.mrf.mxu0  ;;  %v596_v26 = vpop.f32.mrf.mxu1 }
 0x100   :  { %v963_v25 = vpack.c.bf16 %v523_v24, %v521_v22  ;;  %v964_v27 = vpack.c.bf16 %v596_v26, %v594_v23 }
 0x101   :  { %v525_v28 = vpop.f32.mrf.mxu0  ;;  %v598_v29 = vpop.f32.mrf.mxu1 }
 0x102   :  { %827 = vst [vmem:[%s1312_s2 + $0x10] sm:$0xff] %v963_v25  ;;  %828 = vst [vmem:[%s1312_s2 + $0x18] sm:$0xff] %v964_v27 }
 0x103   :  { %v527_v30 = vpop.f32.mrf.mxu0  ;;  %v600_v32 = vpop.f32.mrf.mxu1 }
 0x104   :  { %v967_v31 = vpack.c.bf16 %v527_v30, %v525_v28  ;;  %v968_v33 = vpack.c.bf16 %v600_v32, %v598_v29 }
 0x105   :  { %v531_v34 = vpop.f32.mrf.mxu0  ;;  %v604_v35 = vpop.f32.mrf.mxu1 }
 0x106   :  { %831 = vst [vmem:[%s1312_s2 + $0x30] sm:$0xff] %v967_v31  ;;  %832 = vst [vmem:[%s1312_s2 + $0x38] sm:$0xff] %v968_v33 }
 0x107   :  { %v533_v36 = vpop.f32.mrf.mxu0  ;;  %v606_v38 = vpop.f32.mrf.mxu1 }
 0x108   :  { %v971_v37 = vpack.c.bf16 %v533_v36, %v531_v34  ;;  %v972_v39 = vpack.c.bf16 %v606_v38, %v604_v35 }
 0x109   :  { %v535_v40 = vpop.f32.mrf.mxu0  ;;  %v608_v41 = vpop.f32.mrf.mxu1 }
 0x10a   :  { %835 = vst [vmem:[%s1312_s2 + $0x50] sm:$0xff] %v971_v37  ;;  %836 = vst [vmem:[%s1312_s2 + $0x58] sm:$0xff] %v972_v39 }
 0x10b   :  { %v537_v42 = vpop.f32.mrf.mxu0  ;;  %v610_v44 = vpop.f32.mrf.mxu1 }
 0x10c   :  { %v975_v43 = vpack.c.bf16 %v537_v42, %v535_v40  ;;  %v976_v45 = vpack.c.bf16 %v610_v44, %v608_v41 }
 0x10d   :  { %v541_v3 = vpop.f32.mrf.mxu0  ;;  %v614_v46 = vpop.f32.mrf.mxu1 }
 0x10e   :  { %839 = vst [vmem:[%s1312_s2 + $0x70] sm:$0xff] %v975_v43  ;;  %840 = vst [vmem:[%s1312_s2 + $0x78] sm:$0xff] %v976_v45 }
 0x10f   :  { %v543_v47 = vpop.f32.mrf.mxu0  ;;  %v616_v49 = vpop.f32.mrf.mxu1 }
 0x110   :  { %v979_v48 = vpack.c.bf16 %v543_v47, %v541_v3  ;;  %v980_v50 = vpack.c.bf16 %v616_v49, %v614_v46 }
 0x111   :  { %v545_v51 = vpop.f32.mrf.mxu0  ;;  %v618_v52 = vpop.f32.mrf.mxu1 }
 0x112   :  { %843 = vst [vmem:[%s1312_s2 + $0x90] sm:$0xff] %v979_v48  ;;  %844 = vst [vmem:[%s1312_s2 + $0x98] sm:$0xff] %v980_v50 }
 0x113   :  { %v547_v53 = vpop.f32.mrf.mxu0  ;;  %v620_v55 = vpop.f32.mrf.mxu1 }
 0x114   :  { %v983_v54 = vpack.c.bf16 %v547_v53, %v545_v51  ;;  %v984_v56 = vpack.c.bf16 %v620_v55, %v618_v52 }
 0x115   :  { %v551_v57 = vpop.f32.mrf.mxu0  ;;  %v624_v58 = vpop.f32.mrf.mxu1 }
 0x116   :  { %847 = vst [vmem:[%s1312_s2 + $0xb0] sm:$0xff] %v983_v54  ;;  %848 = vst [vmem:[%s1312_s2 + $0xb8] sm:$0xff] %v984_v56 }
 0x117   :  { %v553_v59 = vpop.f32.mrf.mxu0  ;;  %v626_v61 = vpop.f32.mrf.mxu1 }
 0x118   :  { %v987_v60 = vpack.c.bf16 %v553_v59, %v551_v57  ;;  %v988_v62 = vpack.c.bf16 %v626_v61, %v624_v58 }
 0x119   :  { %v555_v63 = vpop.f32.mrf.mxu0  ;;  %v628_v0 = vpop.f32.mrf.mxu1 }
 0x11a   :  { %851 = vst [vmem:[%s1312_s2 + $0xd0] sm:$0xff] %v987_v60  ;;  %852 = vst [vmem:[%s1312_s2 + $0xd8] sm:$0xff] %v988_v62 }
 0x11b   :  { %v557_v1 = vpop.f32.mrf.mxu0  ;;  %v630_v4 = vpop.f32.mrf.mxu1 }
 0x11c   :  { %v991_v2 = vpack.c.bf16 %v557_v1, %v555_v63  ;;  %v992_v5 = vpack.c.bf16 %v630_v4, %v628_v0 }
 0x11e   :  { %855 = vst [vmem:[%s1312_s2 + $0xf0] sm:$0xff] %v991_v2  ;;  %856 = vst [vmem:[%s1312_s2 + $0xf8] sm:$0xff] %v992_v5 }

// kernel: down_forward.3
= control target key start
LH: loop header
LB: loop body
LE: loop exit
PB: predicated region body
PF: predicated region fallthrough
CT: control target
= control target key end

     0   :  { %s4247_s12 = smov 0   ;;  %s5575_s0 = inlined_call_operand.vmem [shape: bf16[64,1024], index: 0, kind: input, shape index: {}]   ;;  %s5576_s1 = inlined_call_operand.vmem [shape: bf16[3,256,1024], index: 1, kind: input, shape index: {}]   ;;  %s5577_s2 = inlined_call_operand.vmem [shape: bf16[3,16,16], index: 2, kind: input, shape index: {}]   ;;  %s5578_s3 = inlined_call_operand.vmem [shape: f32[64,256], index: 3, kind: output, shape index: {}]  }
   0x1 LB: > { %s3450_s13 = sadd.s32 4294967295, %s4223_s12   ;;  %p3454_p0 = scmp.ge.s32.totalorder %s4223_s12, 1  ;;  %s4223_s12 = sphi %s4247_s12, %s13_s12  }
   0x2   : > { %p139_p1 = scmp.lt.s32.totalorder %s4223_s12, 5 }
   0x4   : > { %p140_p2 = pnand %p3454_p0, %p139_p1 }
   0x5   : > { %s3455_s14 = sshll.u32 (!%p140_p2), %s3450_s13, 1  ;;  %p3461_p4 = scmp.ne.s32.totalorder (!%p140_p2), %s3450_s13, 0 }
   0x6   : > { %143 = sbr.rel (%p140_p2) target bundleno = 1100 (0x44c), region = 32  ;;  %p166_p3 = scmp.lt.s32.totalorder (!%p140_p2), %s3455_s14, 7 }
   0xb   : > { %s5580_s14 = smov (!%p166_p3, %s3455_s14), 7  ;;  %183 = sbr.rel (%p3461_p4) target bundleno = 21 (0x15), region = 36 }
   0xc   : > { %s4130_s15 = sshll.u32 %s5580_s14, 5  ;;  %s4131_s16 = sshll.u32 %s5580_s14, 4 }
   0xd   : > { %s4258_s19 = scalar_lea.vmem %s5575_s0, %s4130_s15  ;;  %s4263_s22 = scalar_lea.vmem %s5578_s3, %s4131_s16 }
  0x10   : > { %v4225_v0 = vmov 0.0  }
  0x11   : > { %184 = vst [vmem:[#allocation2 + $0x10] sm:$0xff] %v4225_v0  ;;  %185 = vst [vmem:[#allocation2] sm:$0xff] %v4225_v0 }
  0x12   : > { %186 = vst [vmem:[#allocation2 + $0x18] sm:$0xff] %v4225_v0  ;;  %187 = vst [vmem:[#allocation2 + $0x8] sm:$0xff] %v4225_v0 }
  0x13   : > { %188 = vst [vmem:[#allocation3] sm:$0xff] %v4225_v0  ;;  %189 = vst [vmem:[#allocation3 + $0x18] sm:$0xff] %v4225_v0 }
  0x14   : > { %190 = vst [vmem:[#allocation3 + $0x8] sm:$0xff] %v4225_v0  ;;  %191 = vst [vmem:[#allocation3 + $0x10] sm:$0xff] %v4225_v0 }
  0x15 PF: > { %v4226_v6 = vmov 0   ;;  %v4142_v8 = vld [vmem:[%s5577_s2] sm:$0xff]   ;;  %v335_v12 = vld [vmem:[%s5576_s1 + $0x1c8] sm:$0xff]  ;;  %vm229_vm0 = vcmask 130048  }
  0x16   : > { %265 = vmatprep.mubr.bf16.mxu0 %v4226_v6  ;;  %v334_v9 = vld [vmem:[%s5576_s1 + $0x1c0] sm:$0xff]  ;;  %v339_v13 = vld [vmem:[%s5576_s1 + $0x1e8] sm:$0xff] }
  0x17   : > { %v338_v10 = vld [vmem:[%s5576_s1 + $0x1e0] sm:$0xff]  ;;  %v3522_v16 = vcombine.low %v335_v12, %v339_v13  ;;  %v3523_v17 = vcombine.high %v335_v12, %v339_v13  ;;  %v327_v19 = vld [vmem:[%s5576_s1 + $0x188] sm:$0xff] }
  0x18   : > { %v193_v1 = vld [vmem:[#allocation2] sm:$0xff]  ;;  %v192_v3 = vld [vmem:[#allocation2 + $0x10] sm:$0xff]  ;;  %v3521_v11 = vcombine.high %v334_v9, %v338_v10  ;;  %v3520_v14 = vcombine.low %v334_v9, %v338_v10  ;;  %v331_v20 = vld [vmem:[%s5576_s1 + $0x1a8] sm:$0xff] }
  0x19   : > { %v195_v2 = vld [vmem:[#allocation2 + $0x8] sm:$0xff]  ;;  %v194_v5 = vld [vmem:[#allocation2 + $0x18] sm:$0xff]  ;;  %v326_v15 = vld [vmem:[%s5576_s1 + $0x180] sm:$0xff]  ;;  %v3515_v22 = vcombine.high %v327_v19, %v331_v20  ;;  %v3514_v29 = vcombine.low %v327_v19, %v331_v20 }
  0x1a   : > { %v4265_v4 = vpack.c.bf16 %v195_v2, %v193_v1  ;;  %v4268_v7 = vpack.c.bf16 %v194_v5, %v192_v3  ;;  %v330_v18 = vld [vmem:[%s5576_s1 + $0x1a0] sm:$0xff]  ;;  %1046 = vmatprep.subr.bf16.mxu1 %v3521_v11  ;;  %v319_v26 = vld [vmem:[%s5576_s1 + $0x148] sm:$0xff] }
  0x1b   : > { %v3513_v21 = vcombine.high %v326_v15, %v330_v18  ;;  %v318_v23 = vld [vmem:[%s5576_s1 + $0x140] sm:$0xff]  ;;  %1047 = vmatpush1.bf16.msra.mxu1 %v3520_v14  ;;  %v3512_v25 = vcombine.low %v326_v15, %v330_v18  ;;  %v323_v27 = vld [vmem:[%s5576_s1 + $0x168] sm:$0xff] }
  0x1c   : > { %247 = vmatprep.subr.bf16.mxu0 %v4265_v4  ;;  %v322_v24 = vld [vmem:[%s5576_s1 + $0x160] sm:$0xff]  ;;  %v3507_v32 = vcombine.high %v319_v26, %v323_v27  ;;  %v311_v34 = vld [vmem:[%s5576_s1 + $0x108] sm:$0xff]  ;;  %v3506_v37 = vcombine.low %v319_v26, %v323_v27 }
  0x1d   : > { %248 = vmatpush1.bf16.msra.mxu0 %v4268_v7  ;;  %1048 = vmatprep.subr.bf16.mxu1 %v3513_v21  ;;  %v3505_v28 = vcombine.high %v318_v23, %v322_v24  ;;  %v310_v30 = vld [vmem:[%s5576_s1 + $0x100] sm:$0xff]  ;;  %v3504_v33 = vcombine.low %v318_v23, %v322_v24  ;;  %v315_v35 = vld [vmem:[%s5576_s1 + $0x128] sm:$0xff] }
  0x1e   : > { %1089 = vmatprep.subr.bf16.mxu0 %v3523_v17  ;;  %v314_v31 = vld [vmem:[%s5576_s1 + $0x120] sm:$0xff]  ;;  %v3499_v40 = vcombine.high %v311_v34, %v315_v35  ;;  %v303_v42 = vld [vmem:[%s5576_s1 + $0xc8] sm:$0xff]  ;;  %v3498_v45 = vcombine.low %v311_v34, %v315_v35 }
  0x1f   : > { %1049 = vmatpush1.bf16.msra.mxu1 %v3512_v25  ;;  %v3497_v36 = vcombine.high %v310_v30, %v314_v31  ;;  %v302_v38 = vld [vmem:[%s5576_s1 + $0xc0] sm:$0xff]  ;;  %v3496_v41 = vcombine.low %v310_v30, %v314_v31  ;;  %v307_v43 = vld [vmem:[%s5576_s1 + $0xe8] sm:$0xff] }
  0x20   : > { %3463 = vmatmul.mubr.msk.bf16.vlgmr.msra.gmra.mxu0 %vm229_vm0, %v4142_v8  ;;  %1050 = vmatprep.subr.bf16.mxu1 %v3505_v28  ;;  %v306_v39 = vld [vmem:[%s5576_s1 + $0xe0] sm:$0xff]  ;;  %v3491_v48 = vcombine.high %v303_v42, %v307_v43  ;;  %v295_v50 = vld [vmem:[%s5576_s1 + $0x88] sm:$0xff]  ;;  %v3490_v53 = vcombine.low %v303_v42, %v307_v43 }
  0x21   : > { %1090 = vmatpush1.bf16.msra.mxu0 %v3522_v16  ;;  %v3489_v44 = vcombine.high %v302_v38, %v306_v39  ;;  %v294_v46 = vld [vmem:[%s5576_s1 + $0x80] sm:$0xff]  ;;  %v3488_v49 = vcombine.low %v302_v38, %v306_v39  ;;  %v299_v51 = vld [vmem:[%s5576_s1 + $0xa8] sm:$0xff] }
  0x22   : > { %1091 = vmatprep.subr.bf16.mxu0 %v3515_v22  ;;  %v298_v47 = vld [vmem:[%s5576_s1 + $0xa0] sm:$0xff]  ;;  %v3483_v56 = vcombine.high %v295_v50, %v299_v51  ;;  %v287_v58 = vld [vmem:[%s5576_s1 + $0x48] sm:$0xff]  ;;  %v3482_v61 = vcombine.low %v295_v50, %v299_v51 }
  0x23   : > { %1051 = vmatpush1.bf16.msra.mxu1 %v3504_v33  ;;  %v3481_v52 = vcombine.high %v294_v46, %v298_v47  ;;  %v286_v54 = vld [vmem:[%s5576_s1 + $0x40] sm:$0xff]  ;;  %v3480_v57 = vcombine.low %v294_v46, %v298_v47  ;;  %v291_v59 = vld [vmem:[%s5576_s1 + $0x68] sm:$0xff] }
  0x24   : > { %1052 = vmatprep.subr.bf16.mxu1 %v3497_v36  ;;  %v290_v55 = vld [vmem:[%s5576_s1 + $0x60] sm:$0xff]  ;;  %v3475_v0 = vcombine.high %v287_v58, %v291_v59  ;;  %v279_v2 = vld [vmem:[%s5576_s1 + $0x8] sm:$0xff]  ;;  %v3474_v8 = vcombine.low %v287_v58, %v291_v59 }
  0x25   : > { %1092 = vmatpush1.bf16.msra.mxu0 %v3514_v29  ;;  %v3473_v60 = vcombine.high %v286_v54, %v290_v55  ;;  %v278_v62 = vld [vmem:[%s5576_s1] sm:$0xff]  ;;  %v3472_v1 = vcombine.low %v286_v54, %v290_v55  ;;  %v283_v3 = vld [vmem:[%s5576_s1 + $0x28] sm:$0xff] }
  0x26   : > { %1093 = vmatprep.subr.bf16.mxu0 %v3507_v32  ;;  %v282_v63 = vld [vmem:[%s5576_s1 + $0x20] sm:$0xff]  ;;  %v3467_v11 = vcombine.high %v279_v2, %v283_v3  ;;  %v399_v13 = vld [vmem:[%s5576_s1 + $0x3c8] sm:$0xff]  ;;  %v3466_v16 = vcombine.low %v279_v2, %v283_v3 }
  0x27   : > { %1053 = vmatpush1.bf16.msra.mxu1 %v3496_v41  ;;  %v3465_v5 = vcombine.high %v278_v62, %v282_v63  ;;  %v398_v9 = vld [vmem:[%s5576_s1 + $0x3c0] sm:$0xff]  ;;  %v3464_v12 = vcombine.low %v278_v62, %v282_v63  ;;  %v403_v14 = vld [vmem:[%s5576_s1 + $0x3e8] sm:$0xff] }
  0x28   : > { %1054 = vmatprep.subr.bf16.mxu1 %v3489_v44  ;;  %v402_v10 = vld [vmem:[%s5576_s1 + $0x3e0] sm:$0xff]  ;;  %v3587_v19 = vcombine.high %v399_v13, %v403_v14  ;;  %v391_v21 = vld [vmem:[%s5576_s1 + $0x388] sm:$0xff]  ;;  %v3586_v24 = vcombine.low %v399_v13, %v403_v14 }
  0x29   : > { %1094 = vmatpush1.bf16.msra.mxu0 %v3506_v37  ;;  %v3585_v15 = vcombine.high %v398_v9, %v402_v10  ;;  %v390_v17 = vld [vmem:[%s5576_s1 + $0x380] sm:$0xff]  ;;  %v3584_v20 = vcombine.low %v398_v9, %v402_v10  ;;  %v395_v22 = vld [vmem:[%s5576_s1 + $0x3a8] sm:$0xff] }
  0x2a   : > { %1095 = vmatprep.subr.bf16.mxu0 %v3499_v40  ;;  %v394_v18 = vld [vmem:[%s5576_s1 + $0x3a0] sm:$0xff]  ;;  %v3579_v27 = vcombine.high %v391_v21, %v395_v22  ;;  %v383_v29 = vld [vmem:[%s5576_s1 + $0x348] sm:$0xff]  ;;  %v3578_v32 = vcombine.low %v391_v21, %v395_v22 }
  0x2b   : > { %1055 = vmatpush1.bf16.msra.mxu1 %v3488_v49  ;;  %v3577_v23 = vcombine.high %v390_v17, %v394_v18  ;;  %v382_v25 = vld [vmem:[%s5576_s1 + $0x340] sm:$0xff]  ;;  %v3576_v28 = vcombine.low %v390_v17, %v394_v18  ;;  %v387_v30 = vld [vmem:[%s5576_s1 + $0x368] sm:$0xff]  ;;  %v337_v17 = vld [vmem:[%s5576_s1 + $0x1d8] sm:$0xff] }
  0x2c   : > { %1056 = vmatprep.subr.bf16.mxu1 %v3481_v52  ;;  %v386_v26 = vld [vmem:[%s5576_s1 + $0x360] sm:$0xff]  ;;  %v3571_v35 = vcombine.high %v383_v29, %v387_v30  ;;  %v375_v37 = vld [vmem:[%s5576_s1 + $0x308] sm:$0xff]  ;;  %v3570_v40 = vcombine.low %v383_v29, %v387_v30  ;;  %v329_v29 = vld [vmem:[%s5576_s1 + $0x198] sm:$0xff] }
  0x2d   : > { %1096 = vmatpush1.bf16.msra.mxu0 %v3498_v45  ;;  %v3569_v31 = vcombine.high %v382_v25, %v386_v26  ;;  %v374_v33 = vld [vmem:[%s5576_s1 + $0x300] sm:$0xff]  ;;  %v3568_v36 = vcombine.low %v382_v25, %v386_v26  ;;  %v379_v38 = vld [vmem:[%s5576_s1 + $0x328] sm:$0xff]  ;;  %v328_v26 = vld [vmem:[%s5576_s1 + $0x190] sm:$0xff] }
  0x2e   : > { %1097 = vmatprep.subr.bf16.mxu0 %v3491_v48  ;;  %v378_v34 = vld [vmem:[%s5576_s1 + $0x320] sm:$0xff]  ;;  %v3563_v43 = vcombine.high %v375_v37, %v379_v38  ;;  %v367_v45 = vld [vmem:[%s5576_s1 + $0x2c8] sm:$0xff]  ;;  %v3562_v48 = vcombine.low %v375_v37, %v379_v38  ;;  %v333_v30 = vld [vmem:[%s5576_s1 + $0x1b8] sm:$0xff] }
  0x2f   : > { %1057 = vmatpush1.bf16.msra.mxu1 %v3480_v57  ;;  %v3561_v39 = vcombine.high %v374_v33, %v378_v34  ;;  %v366_v41 = vld [vmem:[%s5576_s1 + $0x2c0] sm:$0xff]  ;;  %v3560_v44 = vcombine.low %v374_v33, %v378_v34  ;;  %v371_v46 = vld [vmem:[%s5576_s1 + $0x2e8] sm:$0xff]  ;;  %v320_v33 = vld [vmem:[%s5576_s1 + $0x150] sm:$0xff] }
  0x30   : > { %1058 = vmatprep.subr.bf16.mxu1 %v3473_v60  ;;  %v370_v42 = vld [vmem:[%s5576_s1 + $0x2e0] sm:$0xff]  ;;  %v3555_v51 = vcombine.high %v367_v45, %v371_v46  ;;  %v363_v54 = vld [vmem:[%s5576_s1 + $0x2a8] sm:$0xff]  ;;  %v321_v37 = vld [vmem:[%s5576_s1 + $0x158] sm:$0xff] }
  0x31   : > { %1098 = vmatpush1.bf16.msra.mxu0 %v3490_v53  ;;  %v3553_v47 = vcombine.high %v366_v41, %v370_v42  ;;  %v358_v49 = vld [vmem:[%s5576_s1 + $0x280] sm:$0xff]  ;;  %v3552_v52 = vcombine.low %v366_v41, %v370_v42  ;;  %v359_v53 = vld [vmem:[%s5576_s1 + $0x288] sm:$0xff]  ;;  %v325_v38 = vld [vmem:[%s5576_s1 + $0x178] sm:$0xff] }
  0x32   : > { %1099 = vmatprep.subr.bf16.mxu0 %v3483_v56  ;;  %v362_v50 = vld [vmem:[%s5576_s1 + $0x2a0] sm:$0xff]  ;;  %v3554_v56 = vcombine.low %v367_v45, %v371_v46  ;;  %v3547_v57 = vcombine.high %v359_v53, %v363_v54  ;;  %v3546_v59 = vcombine.low %v359_v53, %v363_v54  ;;  %v351_v62 = vld [vmem:[%s5576_s1 + $0x248] sm:$0xff]  ;;  %v3511_v42 = vcombine.high %v321_v37, %v325_v38  ;;  %v313_v45 = vld [vmem:[%s5576_s1 + $0x118] sm:$0xff] }
  0x33   : > { %1059 = vmatpush1.bf16.msra.mxu1 %v3472_v1  ;;  %v3545_v55 = vcombine.high %v358_v49, %v362_v50  ;;  %v3544_v58 = vcombine.low %v358_v49, %v362_v50  ;;  %v350_v60 = vld [vmem:[%s5576_s1 + $0x240] sm:$0xff]  ;;  %v343_v9 = vld [vmem:[%s5576_s1 + $0x208] sm:$0xff]  ;;  %v317_v46 = vld [vmem:[%s5576_s1 + $0x138] sm:$0xff] }
  0x34   : > { %1060 = vmatprep.subr.bf16.mxu1 %v3465_v5  ;;  %v342_v5 = vld [vmem:[%s5576_s1 + $0x200] sm:$0xff]  ;;  %v3503_v50 = vcombine.high %v313_v45, %v317_v46  ;;  %v305_v53 = vld [vmem:[%s5576_s1 + $0xd8] sm:$0xff] }
  0x35   : > { %1100 = vmatpush1.bf16.msra.mxu0 %v3482_v61  ;;  %v354_v61 = vld [vmem:[%s5576_s1 + $0x260] sm:$0xff]  ;;  %v309_v54 = vld [vmem:[%s5576_s1 + $0xf8] sm:$0xff] }
  0x36   : > { %1101 = vmatprep.subr.bf16.mxu0 %v3475_v0  ;;  %v3537_v63 = vcombine.high %v350_v60, %v354_v61  ;;  %v355_v0 = vld [vmem:[%s5576_s1 + $0x268] sm:$0xff]  ;;  %v3536_v3 = vcombine.low %v350_v60, %v354_v61  ;;  %v300_v60 = vld [vmem:[%s5576_s1 + $0xb0] sm:$0xff]  ;;  %v297_v61 = vld [vmem:[%s5576_s1 + $0x98] sm:$0xff] }
  0x37   : > { %1061 = vmatpush1.bf16.msra.mxu1 %v3464_v12  ;;  %v3538_v1 = vcombine.low %v351_v62, %v355_v0  ;;  %v3539_v2 = vcombine.high %v351_v62, %v355_v0  ;;  %v301_v62 = vld [vmem:[%s5576_s1 + $0xb8] sm:$0xff]  ;;  %v3494_v0 = vcombine.low %v305_v53, %v309_v54 }
  0x38   : > { %1062 = vmatprep.subr.bf16.mxu1 %v3585_v15  ;;  %v336_v15 = vld [vmem:[%s5576_s1 + $0x1d0] sm:$0xff] }
  0x39   : > { %1102 = vmatpush1.bf16.msra.mxu0 %v3474_v8  ;;  %v346_v8 = vld [vmem:[%s5576_s1 + $0x220] sm:$0xff] }
  0x3a   : > { %1103 = vmatprep.subr.bf16.mxu0 %v3467_v11  ;;  %v3529_v10 = vcombine.high %v342_v5, %v346_v8  ;;  %v347_v11 = vld [vmem:[%s5576_s1 + $0x228] sm:$0xff]  ;;  %v3528_v14 = vcombine.low %v342_v5, %v346_v8  ;;  %v292_v5 = vld [vmem:[%s5576_s1 + $0x70] sm:$0xff]  ;;  %v289_v8 = vld [vmem:[%s5576_s1 + $0x58] sm:$0xff] }
  0x3b   : > { %1063 = vmatpush2.bf16.msra.mxu1 %v3584_v20  ;;  %v3530_v12 = vcombine.low %v343_v9, %v347_v11  ;;  %v3531_v13 = vcombine.high %v343_v9, %v347_v11  ;;  %v293_v9 = vld [vmem:[%s5576_s1 + $0x78] sm:$0xff]  ;;  %v3486_v11 = vcombine.low %v297_v61, %v301_v62 }
  0x3c   : > { %1064 = vmatprep.subr.bf16.mxu1 %v3577_v23 }
  0x3d   : > { %1104 = vmatpush1.bf16.msra.mxu0 %v3466_v16  ;;  %v340_v16 = vld [vmem:[%s5576_s1 + $0x1f0] sm:$0xff] }
  0x3e   : > { %1105 = vmatprep.subr.bf16.mxu0 %v3587_v19  ;;  %v3525_v18 = vcombine.high %v336_v15, %v340_v16  ;;  %v341_v19 = vld [vmem:[%s5576_s1 + $0x1f8] sm:$0xff]  ;;  %v3524_v20 = vcombine.low %v336_v15, %v340_v16  ;;  %v284_v15 = vld [vmem:[%s5576_s1 + $0x30] sm:$0xff] }
  0x3f   : > { %1065 = vmatpush2.bf16.msra.mxu1 %v3576_v28  ;;  %v3526_v21 = vcombine.low %v337_v17, %v341_v19  ;;  %v3527_v22 = vcombine.high %v337_v17, %v341_v19  ;;  %v332_v28 = vld [vmem:[%s5576_s1 + $0x1b0] sm:$0xff]  ;;  %v281_v16 = vld [vmem:[%s5576_s1 + $0x18] sm:$0xff]  ;;  %v3478_v19 = vcombine.low %v289_v8, %v293_v9 }
  0x40   : > { %1066 = vmatprep.subr.bf16.mxu1 %v3569_v31  ;;  %v3517_v34 = vcombine.high %v328_v26, %v332_v28  ;;  %v285_v17 = vld [vmem:[%s5576_s1 + $0x38] sm:$0xff] }
  0x41   : > { %1106 = vmatpush2.bf16.msra.mxu0 %v3586_v24 }
  0x42   : > { %1107 = vmatprep.subr.bf16.mxu0 %v3579_v27 }
  0x43   : > { %1067 = vmatpush2.bf16.msra.mxu1 %v3568_v36  ;;  %v324_v36 = vld [vmem:[%s5576_s1 + $0x170] sm:$0xff] }
  0x44   : > { %1068 = vmatprep.subr.bf16.mxu1 %v3561_v39  ;;  %v3516_v39 = vcombine.low %v328_v26, %v332_v28  ;;  %v3509_v41 = vcombine.high %v320_v33, %v324_v36 }
  0x45   : > { %1108 = vmatpush2.bf16.msra.mxu0 %v3578_v32 }
  0x46   : > { %1109 = vmatprep.subr.bf16.mxu0 %v3571_v35  ;;  %v3519_v35 = vcombine.high %v329_v29, %v333_v30 }
  0x47   : > { %1069 = vmatpush2.bf16.msra.mxu1 %v3560_v44  ;;  %v316_v44 = vld [vmem:[%s5576_s1 + $0x130] sm:$0xff] }
  0x48   : > { %1070 = vmatprep.subr.bf16.mxu1 %v3553_v47  ;;  %v3508_v47 = vcombine.low %v320_v33, %v324_v36  ;;  %v393_v33 = vld [vmem:[%s5576_s1 + $0x398] sm:$0xff] }
  0x49   : > { %1110 = vmatpush2.bf16.msra.mxu0 %v3570_v40  ;;  %v3518_v40 = vcombine.low %v329_v29, %v333_v30  ;;  %v392_v30 = vld [vmem:[%s5576_s1 + $0x390] sm:$0xff] }
  0x4a   : > { %1111 = vmatprep.subr.bf16.mxu0 %v3563_v43  ;;  %v312_v43 = vld [vmem:[%s5576_s1 + $0x110] sm:$0xff] }
  0x4b   : > { %1071 = vmatpush2.bf16.msra.mxu1 %v3552_v52  ;;  %v3501_v49 = vcombine.high %v312_v43, %v316_v44  ;;  %v308_v52 = vld [vmem:[%s5576_s1 + $0xf0] sm:$0xff] }
  0x4c   : > { %1072 = vmatprep.subr.bf16.mxu1 %v3545_v55  ;;  %v3500_v55 = vcombine.low %v312_v43, %v316_v44 }
  0x4d   : > { %1112 = vmatpush2.bf16.msra.mxu0 %v3562_v48  ;;  %v3510_v48 = vcombine.low %v321_v37, %v325_v38 }
  0x4e   : > { %1113 = vmatprep.subr.bf16.mxu0 %v3555_v51  ;;  %v304_v51 = vld [vmem:[%s5576_s1 + $0xd0] sm:$0xff] }
  0x4f   : > { %1073 = vmatpush2.bf16.msra.mxu1 %v3544_v58  ;;  %v3495_v58 = vcombine.high %v305_v53, %v309_v54 }
  0x50   : > { %1074 = vmatprep.subr.bf16.mxu1 %v3537_v63  ;;  %v3492_v63 = vcombine.low %v304_v51, %v308_v52 }
  0x51   : > { %1114 = vmatpush2.bf16.msra.mxu0 %v3554_v56  ;;  %v3502_v56 = vcombine.low %v313_v45, %v317_v46 }
  0x52   : > { %1115 = vmatprep.subr.bf16.mxu0 %v3547_v57  ;;  %v3493_v57 = vcombine.high %v304_v51, %v308_v52 }
  0x53   : > { %1075 = vmatpush2.bf16.msra.mxu1 %v3536_v3  ;;  %v288_v3 = vld [vmem:[%s5576_s1 + $0x50] sm:$0xff] }
  0x54   : > { %1076 = vmatprep.subr.bf16.mxu1 %v3529_v10 }
  0x55   : > { %1116 = vmatpush2.bf16.msra.mxu0 %v3546_v59  ;;  %v296_v59 = vld [vmem:[%s5576_s1 + $0x90] sm:$0xff] }
  0x56   : > { %1117 = vmatprep.subr.bf16.mxu0 %v3539_v2  ;;  %v3487_v2 = vcombine.high %v297_v61, %v301_v62  ;;  %v3484_v10 = vcombine.low %v296_v59, %v300_v60 }
  0x57   : > { %1077 = vmatpush2.bf16.msra.mxu1 %v3528_v14  ;;  %v280_v14 = vld [vmem:[%s5576_s1 + $0x10] sm:$0xff] }
  0x58   : > { %1132 = vmatprep.subr.bf16.mxu1 %v3525_v18  ;;  %v3476_v18 = vcombine.low %v288_v3, %v292_v5  ;;  %v3468_v26 = vcombine.low %v280_v14, %v284_v15 }
  0x59   : > { %1118 = vmatpush2.bf16.msra.mxu0 %v3538_v1  ;;  %v3485_v1 = vcombine.high %v296_v59, %v300_v60 }
  0x5a   : > { %1119 = vmatprep.subr.bf16.mxu0 %v3531_v13  ;;  %v3479_v13 = vcombine.high %v289_v8, %v293_v9 }
  0x5d   : > { %1120 = vmatpush2.bf16.msra.mxu0 %v3530_v12  ;;  %v3477_v12 = vcombine.high %v288_v3, %v292_v5 }
  0x5e   : > { %1175 = vmatprep.subr.bf16.mxu0 %v3527_v22  ;;  %v400_v22 = vld [vmem:[%s5576_s1 + $0x3d0] sm:$0xff] }
  0xe0   : > { %v267_v23 = vpop.f32.mrf.mxu0 }
  0xe2   : > { %v269_v24 = vpop.f32.mrf.mxu0 }
  0xe4   : > { %v271_v25 = vpop.f32.mrf.mxu0 }
  0xe5   : > { %v4492_v32 = vpack.c.bf16 %v271_v25, %v267_v23  ;;  %v404_v23 = vld [vmem:[%s5576_s1 + $0x3f0] sm:$0xff]  ;;  %v405_v25 = vld [vmem:[%s5576_s1 + $0x3f8] sm:$0xff] }
  0xe6   : > { %v273_v27 = vpop.f32.mrf.mxu0  ;;  %v3589_v28 = vcombine.high %v400_v22, %v404_v23 }
  0xe7   : > { %v277_v31 = vpack.c.bf16 %v273_v27, %v269_v24  ;;  %v401_v24 = vld [vmem:[%s5576_s1 + $0x3d8] sm:$0xff]  ;;  %v3470_v27 = vcombine.low %v281_v16, %v285_v17 }
  0xe8   : > { %v3591_v29 = vcombine.high %v401_v24, %v405_v25  ;;  %v3590_v36 = vcombine.low %v401_v24, %v405_v25 }
  0xe9   : > { %1078 = vmatprep.mubr.bf16.mxu1 %v277_v31  ;;  %1121 = vmatprep.mubr.bf16.mxu0 %v277_v31 }
  0xea   : > { %1079 = vmatmul.mubr.bf16.vlgmr.msra.gmra.mxu1 %v4492_v32  ;;  %1122 = vmatmul.mubr.bf16.vlgmr.msra.gmra.mxu0 %v4492_v32 }
  0xeb   : > { %1133 = vmatpush1.bf16.msra.mxu1 %v3524_v20  ;;  %1176 = vmatpush1.bf16.msra.mxu0 %v3526_v21  ;;  %v3469_v20 = vcombine.high %v280_v14, %v284_v15  ;;  %v3471_v21 = vcombine.high %v281_v16, %v285_v17 }
  0xec   : > { %1164 = vmatprep.mubr.bf16.mxu1 %v277_v31  ;;  %1207 = vmatprep.mubr.bf16.mxu0 %v277_v31  ;;  %v396_v31 = vld [vmem:[%s5576_s1 + $0x3b0] sm:$0xff] }
  0xed   : > { %1134 = vmatprep.subr.bf16.mxu1 %v3517_v34  ;;  %1177 = vmatprep.subr.bf16.mxu0 %v3519_v35  ;;  %v397_v34 = vld [vmem:[%s5576_s1 + $0x3b8] sm:$0xff]  ;;  %v3588_v35 = vcombine.low %v400_v22, %v404_v23  ;;  %v3581_v37 = vcombine.high %v392_v30, %v396_v31  ;;  %v3580_v43 = vcombine.low %v392_v30, %v396_v31  ;;  %v3656_v30 = vld [vmem:[%s5576_s1 + $0x5e0] sm:$0xff] }
  0xee   : > { %v3583_v38 = vcombine.high %v393_v33, %v397_v34  ;;  %v3582_v44 = vcombine.low %v393_v33, %v397_v34  ;;  %v3657_v34 = vld [vmem:[%s5576_s1 + $0x5e8] sm:$0xff] }
  0xef   : > { %1135 = vmatpush1.bf16.msra.mxu1 %v3516_v39  ;;  %1178 = vmatpush1.bf16.msra.mxu0 %v3518_v40  ;;  %v384_v39 = vld [vmem:[%s5576_s1 + $0x350] sm:$0xff] }
  0xf0   : > { %1136 = vmatprep.subr.bf16.mxu1 %v3509_v41  ;;  %1179 = vmatprep.subr.bf16.mxu0 %v3511_v42  ;;  %v388_v40 = vld [vmem:[%s5576_s1 + $0x370] sm:$0xff]  ;;  %v385_v41 = vld [vmem:[%s5576_s1 + $0x358] sm:$0xff] }
  0xf1   : > { %v389_v42 = vld [vmem:[%s5576_s1 + $0x378] sm:$0xff]  ;;  %v3573_v45 = vcombine.high %v384_v39, %v388_v40  ;;  %v3572_v51 = vcombine.low %v384_v39, %v388_v40  ;;  %v3645_v40 = vld [vmem:[%s5576_s1 + $0x588] sm:$0xff] }
  0xf2   : > { %v3575_v46 = vcombine.high %v385_v41, %v389_v42  ;;  %v3574_v52 = vcombine.low %v385_v41, %v389_v42  ;;  %v3649_v41 = vld [vmem:[%s5576_s1 + $0x5a8] sm:$0xff]  ;;  %v3636_v42 = vld [vmem:[%s5576_s1 + $0x540] sm:$0xff] }
  0xf3   : > { %1137 = vmatpush1.bf16.msra.mxu1 %v3508_v47  ;;  %1180 = vmatpush1.bf16.msra.mxu0 %v3510_v48  ;;  %v376_v47 = vld [vmem:[%s5576_s1 + $0x310] sm:$0xff] }
  0xf4   : > { %1138 = vmatprep.subr.bf16.mxu1 %v3501_v49  ;;  %1181 = vmatprep.subr.bf16.mxu0 %v3503_v50  ;;  %v380_v48 = vld [vmem:[%s5576_s1 + $0x330] sm:$0xff]  ;;  %v377_v49 = vld [vmem:[%s5576_s1 + $0x318] sm:$0xff] }
  0xf5   : > { %v381_v50 = vld [vmem:[%s5576_s1 + $0x338] sm:$0xff]  ;;  %v3565_v53 = vcombine.high %v376_v47, %v380_v48  ;;  %v3564_v59 = vcombine.low %v376_v47, %v380_v48  ;;  %v3774_v48 = vcombine.low %v3645_v40, %v3649_v41 }
  0xf6   : > { %v3567_v54 = vcombine.high %v377_v49, %v381_v50  ;;  %v3566_v60 = vcombine.low %v377_v49, %v381_v50 }
  0xf7   : > { %1139 = vmatpush1.bf16.msra.mxu1 %v3500_v55  ;;  %1182 = vmatpush1.bf16.msra.mxu0 %v3502_v56  ;;  %v368_v55 = vld [vmem:[%s5576_s1 + $0x2d0] sm:$0xff] }
  0xf8   : > { %1140 = vmatprep.subr.bf16.mxu1 %v3493_v57  ;;  %1183 = vmatprep.subr.bf16.mxu0 %v3495_v58  ;;  %v372_v56 = vld [vmem:[%s5576_s1 + $0x2f0] sm:$0xff]  ;;  %v369_v57 = vld [vmem:[%s5576_s1 + $0x2d8] sm:$0xff] }
  0xf9   : > { %v373_v58 = vld [vmem:[%s5576_s1 + $0x2f8] sm:$0xff]  ;;  %v3557_v61 = vcombine.high %v368_v55, %v372_v56  ;;  %v3556_v3 = vcombine.low %v368_v55, %v372_v56 }
  0xfa   : > { %v3559_v62 = vcombine.high %v369_v57, %v373_v58  ;;  %v3558_v5 = vcombine.low %v369_v57, %v373_v58 }
  0xfb   : > { %1141 = vmatpush1.bf16.msra.mxu1 %v3492_v63  ;;  %1184 = vmatpush1.bf16.msra.mxu0 %v3494_v0  ;;  %v360_v63 = vld [vmem:[%s5576_s1 + $0x290] sm:$0xff] }
  0xfc   : > { %1142 = vmatprep.subr.bf16.mxu1 %v3485_v1  ;;  %1185 = vmatprep.subr.bf16.mxu0 %v3487_v2  ;;  %v364_v0 = vld [vmem:[%s5576_s1 + $0x2b0] sm:$0xff]  ;;  %v361_v1 = vld [vmem:[%s5576_s1 + $0x298] sm:$0xff] }
  0xfd   : > { %v365_v2 = vld [vmem:[%s5576_s1 + $0x2b8] sm:$0xff]  ;;  %v3549_v8 = vcombine.high %v360_v63, %v364_v0  ;;  %v3548_v14 = vcombine.low %v360_v63, %v364_v0 }
  0xfe   : > { %v3551_v9 = vcombine.high %v361_v1, %v365_v2  ;;  %v3550_v15 = vcombine.low %v361_v1, %v365_v2 }
  0xff   : > { %1143 = vmatpush1.bf16.msra.mxu1 %v3484_v10  ;;  %1186 = vmatpush1.bf16.msra.mxu0 %v3486_v11  ;;  %v352_v10 = vld [vmem:[%s5576_s1 + $0x250] sm:$0xff] }
 0x100   : > { %1144 = vmatprep.subr.bf16.mxu1 %v3477_v12  ;;  %1187 = vmatprep.subr.bf16.mxu0 %v3479_v13  ;;  %v356_v11 = vld [vmem:[%s5576_s1 + $0x270] sm:$0xff]  ;;  %v353_v12 = vld [vmem:[%s5576_s1 + $0x258] sm:$0xff] }
 0x101   : > { %v357_v13 = vld [vmem:[%s5576_s1 + $0x278] sm:$0xff]  ;;  %v3541_v16 = vcombine.high %v352_v10, %v356_v11  ;;  %v3540_v22 = vcombine.low %v352_v10, %v356_v11 }
 0x102   : > { %v3543_v17 = vcombine.high %v353_v12, %v357_v13  ;;  %v3542_v23 = vcombine.low %v353_v12, %v357_v13 }
 0x103   : > { %1145 = vmatpush1.bf16.msra.mxu1 %v3476_v18  ;;  %1188 = vmatpush1.bf16.msra.mxu0 %v3478_v19  ;;  %v344_v18 = vld [vmem:[%s5576_s1 + $0x210] sm:$0xff] }
 0x104   : > { %1146 = vmatprep.subr.bf16.mxu1 %v3469_v20  ;;  %1189 = vmatprep.subr.bf16.mxu0 %v3471_v21  ;;  %v348_v19 = vld [vmem:[%s5576_s1 + $0x230] sm:$0xff]  ;;  %v345_v20 = vld [vmem:[%s5576_s1 + $0x218] sm:$0xff] }
 0x105   : > { %v349_v21 = vld [vmem:[%s5576_s1 + $0x238] sm:$0xff]  ;;  %v3533_v24 = vcombine.high %v344_v18, %v348_v19 }
 0x106   : > { %v3535_v25 = vcombine.high %v345_v20, %v349_v21 }
 0x107   : > { %1147 = vmatpush1.bf16.msra.mxu1 %v3468_v26  ;;  %1190 = vmatpush1.bf16.msra.mxu0 %v3470_v27  ;;  %v3532_v26 = vcombine.low %v344_v18, %v348_v19  ;;  %v3534_v27 = vcombine.low %v345_v20, %v349_v21 }
 0x108   : > { %1148 = vmatprep.subr.bf16.mxu1 %v3589_v28  ;;  %1191 = vmatprep.subr.bf16.mxu0 %v3591_v29  ;;  %v4143_v28 = vld [vmem:[%s5577_s2 + $0x8] sm:$0xff]   ;;  %v3652_v29 = vld [vmem:[%s5576_s1 + $0x5c0] sm:$0xff] }
 0x109   : > { %v3780_v31 = vcombine.low %v3652_v29, %v3656_v30  ;;  %v3781_v33 = vcombine.high %v3652_v29, %v3656_v30  ;;  %v3716_v30 = vld [vmem:[%s5576_s1 + $0x7c0] sm:$0xff] }
 0x10b   : > { %1149 = vmatpush2.bf16.msra.mxu1 %v3588_v35  ;;  %1192 = vmatpush2.bf16.msra.mxu0 %v3590_v36  ;;  %v3644_v35 = vld [vmem:[%s5576_s1 + $0x580] sm:$0xff] }
 0x10c   : > { %1150 = vmatprep.subr.bf16.mxu1 %v3581_v37  ;;  %1193 = vmatprep.subr.bf16.mxu0 %v3583_v38  ;;  %v3648_v36 = vld [vmem:[%s5576_s1 + $0x5a0] sm:$0xff] }
 0x10d   : > { %v3773_v39 = vcombine.high %v3644_v35, %v3648_v36  ;;  %v3772_v47 = vcombine.low %v3644_v35, %v3648_v36 }
 0x10f   : > { %1151 = vmatpush2.bf16.msra.mxu1 %v3580_v43  ;;  %1194 = vmatpush2.bf16.msra.mxu0 %v3582_v44  ;;  %v3775_v43 = vcombine.high %v3645_v40, %v3649_v41  ;;  %v3640_v44 = vld [vmem:[%s5576_s1 + $0x560] sm:$0xff]  ;;  %v3709_v40 = vld [vmem:[%s5576_s1 + $0x788] sm:$0xff] }
 0x110   : > { %1152 = vmatprep.subr.bf16.mxu1 %v3573_v45  ;;  %1195 = vmatprep.subr.bf16.mxu0 %v3575_v46  ;;  %v3637_v45 = vld [vmem:[%s5576_s1 + $0x548] sm:$0xff]  ;;  %v3765_v49 = vcombine.high %v3636_v42, %v3640_v44  ;;  %v3764_v55 = vcombine.low %v3636_v42, %v3640_v44 }
 0x111   : > { %v3641_v46 = vld [vmem:[%s5576_s1 + $0x568] sm:$0xff] }
 0x112   : > { %v3767_v50 = vcombine.high %v3637_v45, %v3641_v46  ;;  %v3766_v56 = vcombine.low %v3637_v45, %v3641_v46  ;;  %v3713_v41 = vld [vmem:[%s5576_s1 + $0x7a8] sm:$0xff]  ;;  %v3700_v46 = vld [vmem:[%s5576_s1 + $0x740] sm:$0xff] }
 0x113   : > { %1153 = vmatpush2.bf16.msra.mxu1 %v3572_v51  ;;  %1196 = vmatpush2.bf16.msra.mxu0 %v3574_v52  ;;  %v3628_v51 = vld [vmem:[%s5576_s1 + $0x500] sm:$0xff]  ;;  %v3839_v45 = vcombine.high %v3709_v40, %v3713_v41 }
 0x114   : > { %1154 = vmatprep.subr.bf16.mxu1 %v3565_v53  ;;  %1197 = vmatprep.subr.bf16.mxu0 %v3567_v54  ;;  %v3632_v52 = vld [vmem:[%s5576_s1 + $0x520] sm:$0xff]  ;;  %v3629_v53 = vld [vmem:[%s5576_s1 + $0x508] sm:$0xff] }
 0x115   : > { %v3633_v54 = vld [vmem:[%s5576_s1 + $0x528] sm:$0xff]  ;;  %v3757_v57 = vcombine.high %v3628_v51, %v3632_v52  ;;  %v3756_v63 = vcombine.low %v3628_v51, %v3632_v52  ;;  %v3838_v51 = vcombine.low %v3709_v40, %v3713_v41 }
 0x116   : > { %v3759_v58 = vcombine.high %v3629_v53, %v3633_v54  ;;  %v3758_v0 = vcombine.low %v3629_v53, %v3633_v54  ;;  %v3692_v54 = vld [vmem:[%s5576_s1 + $0x700] sm:$0xff] }
 0x117   : > { %1155 = vmatpush2.bf16.msra.mxu1 %v3564_v59  ;;  %1198 = vmatpush2.bf16.msra.mxu0 %v3566_v60  ;;  %v3620_v59 = vld [vmem:[%s5576_s1 + $0x4c0] sm:$0xff] }
 0x118   : > { %1156 = vmatprep.subr.bf16.mxu1 %v3557_v61  ;;  %1199 = vmatprep.subr.bf16.mxu0 %v3559_v62  ;;  %v3624_v60 = vld [vmem:[%s5576_s1 + $0x4e0] sm:$0xff]  ;;  %v3621_v61 = vld [vmem:[%s5576_s1 + $0x4c8] sm:$0xff] }
 0x119   : > { %v3625_v62 = vld [vmem:[%s5576_s1 + $0x4e8] sm:$0xff]  ;;  %v3749_v1 = vcombine.high %v3620_v59, %v3624_v60  ;;  %v3748_v10 = vcombine.low %v3620_v59, %v3624_v60 }
 0x11a   : > { %v3751_v2 = vcombine.high %v3621_v61, %v3625_v62  ;;  %v3750_v11 = vcombine.low %v3621_v61, %v3625_v62 }
 0x11b   : > { %1157 = vmatpush2.bf16.msra.mxu1 %v3556_v3  ;;  %1200 = vmatpush2.bf16.msra.mxu0 %v3558_v5  ;;  %v3612_v3 = vld [vmem:[%s5576_s1 + $0x480] sm:$0xff] }
 0x11c   : > { %1158 = vmatprep.subr.bf16.mxu1 %v3549_v8  ;;  %1201 = vmatprep.subr.bf16.mxu0 %v3551_v9  ;;  %v3616_v5 = vld [vmem:[%s5576_s1 + $0x4a0] sm:$0xff]  ;;  %v3613_v8 = vld [vmem:[%s5576_s1 + $0x488] sm:$0xff] }
 0x11d   : > { %v3617_v9 = vld [vmem:[%s5576_s1 + $0x4a8] sm:$0xff]  ;;  %v3741_v12 = vcombine.high %v3612_v3, %v3616_v5  ;;  %v3740_v18 = vcombine.low %v3612_v3, %v3616_v5 }
 0x11e   : > { %v3743_v13 = vcombine.high %v3613_v8, %v3617_v9  ;;  %v3742_v19 = vcombine.low %v3613_v8, %v3617_v9  ;;  %v3685_v3 = vld [vmem:[%s5576_s1 + $0x6c8] sm:$0xff] }
 0x11f   : > { %1159 = vmatpush2.bf16.msra.mxu1 %v3548_v14  ;;  %1202 = vmatpush2.bf16.msra.mxu0 %v3550_v15  ;;  %v3604_v14 = vld [vmem:[%s5576_s1 + $0x440] sm:$0xff]  ;;  %v3689_v5 = vld [vmem:[%s5576_s1 + $0x6e8] sm:$0xff] }
 0x120   : > { %1160 = vmatprep.subr.bf16.mxu1 %v3541_v16  ;;  %1203 = vmatprep.subr.bf16.mxu0 %v3543_v17  ;;  %v3608_v15 = vld [vmem:[%s5576_s1 + $0x460] sm:$0xff]  ;;  %v3605_v16 = vld [vmem:[%s5576_s1 + $0x448] sm:$0xff]  ;;  %v3814_v9 = vcombine.low %v3685_v3, %v3689_v5 }
 0x121   : > { %v3609_v17 = vld [vmem:[%s5576_s1 + $0x468] sm:$0xff]  ;;  %v3733_v20 = vcombine.high %v3604_v14, %v3608_v15 }
 0x122   : > { %v3735_v21 = vcombine.high %v3605_v16, %v3609_v17 }
 0x123   : > { %1161 = vmatpush2.bf16.msra.mxu1 %v3540_v22  ;;  %1204 = vmatpush2.bf16.msra.mxu0 %v3542_v23  ;;  %v3596_v22 = vld [vmem:[%s5576_s1 + $0x400] sm:$0xff] }
 0x124   : > { %1162 = vmatprep.subr.bf16.mxu1 %v3533_v24  ;;  %1205 = vmatprep.subr.bf16.mxu0 %v3535_v25  ;;  %v3600_v23 = vld [vmem:[%s5576_s1 + $0x420] sm:$0xff]  ;;  %v3597_v24 = vld [vmem:[%s5576_s1 + $0x408] sm:$0xff] }
 0x125   : > { %v3601_v25 = vld [vmem:[%s5576_s1 + $0x428] sm:$0xff] }
 0x126   : > { %v3727_v29 = vcombine.high %v3597_v24, %v3601_v25  ;;  %v3726_v35 = vcombine.low %v3597_v24, %v3601_v25 }
 0x127   : > { %1163 = vmatpush2.bf16.msra.mxu1 %v3532_v26  ;;  %1206 = vmatpush2.bf16.msra.mxu0 %v3534_v27  ;;  %v3732_v26 = vcombine.low %v3604_v14, %v3608_v15  ;;  %v3734_v27 = vcombine.low %v3605_v16, %v3609_v17  ;;  %v3681_v14 = vld [vmem:[%s5576_s1 + $0x6a8] sm:$0xff] }
 0x128   : > { %1259 = vmatprep.subr.bf16.mxu1 %v4265_v4  ;;  %2059 = vmatprep.subr.bf16.mxu0 %v3781_v33  ;;  %v3721_v33 = vld [vmem:[%s5576_s1 + $0x7e8] sm:$0xff] }
 0x12a   : > { %1165 = vmatmul.mubr.bf16.vlgmr.msra.gmra.mxu1 %v4492_v32  ;;  %1208 = vmatmul.mubr.bf16.vlgmr.msra.gmra.mxu0 %v4492_v32  ;;  %v3653_v32 = vld [vmem:[%s5576_s1 + $0x5c8] sm:$0xff] }
 0x12b   : > { %1260 = vmatpush1.bf16.msra.mxu1 %v4268_v7  ;;  %1277 = vmatprep.mubr.bf16.mxu1 %v4226_v6  ;;  %v3782_v37 = vcombine.low %v3653_v32, %v3657_v34  ;;  %v3783_v38 = vcombine.high %v3653_v32, %v3657_v34  ;;  %v3720_v32 = vld [vmem:[%s5576_s1 + $0x7e0] sm:$0xff]  ;;  %v3724_v34 = vcombine.low %v3596_v22, %v3600_v23 }
 0x12c   : > { %2060 = vmatpush1.bf16.msra.mxu0 %v3780_v31  ;;  %v3717_v31 = vld [vmem:[%s5576_s1 + $0x7c8] sm:$0xff]  ;;  %v3845_v36 = vcombine.high %v3716_v30, %v3720_v32  ;;  %v3844_v42 = vcombine.low %v3716_v30, %v3720_v32 }
 0x12d   : > { %2102 = vmatprep.subr.bf16.mxu1 %v3783_v38  ;;  %2061 = vmatprep.subr.bf16.mxu0 %v3773_v39  ;;  %v3708_v38 = vld [vmem:[%s5576_s1 + $0x780] sm:$0xff]  ;;  %v3665_v32 = vld [vmem:[%s5576_s1 + $0x628] sm:$0xff] }
 0x12e   : > { %v3712_v39 = vld [vmem:[%s5576_s1 + $0x7a0] sm:$0xff] }
 0x12f   : > { %v3837_v44 = vcombine.high %v3708_v38, %v3712_v39 }
 0x130   : > { %2062 = vmatpush1.bf16.msra.mxu0 %v3772_v47  ;;  %v3704_v47 = vld [vmem:[%s5576_s1 + $0x760] sm:$0xff] }
 0x131   : > { %2063 = vmatprep.subr.bf16.mxu0 %v3765_v49  ;;  %v3705_v49 = vld [vmem:[%s5576_s1 + $0x768] sm:$0xff]  ;;  %v3829_v52 = vcombine.high %v3700_v46, %v3704_v47 }
 0x132   : > { %3595 = vmatmul.mubr.msk.bf16.vlgmr.msra.gmra.mxu1 %vm229_vm0, %v4143_v28  ;;  %v3725_v28 = vcombine.high %v3596_v22, %v3600_v23  ;;  %v3673_v23 = vld [vmem:[%s5576_s1 + $0x668] sm:$0xff] }
 0x133   : > { %2103 = vmatpush1.bf16.msra.mxu1 %v3782_v37  ;;  %v3847_v37 = vcombine.high %v3717_v31, %v3721_v33 }
 0x134   : > { %2104 = vmatprep.subr.bf16.mxu1 %v3775_v43  ;;  %2064 = vmatpush1.bf16.msra.mxu0 %v3764_v55  ;;  %v3846_v43 = vcombine.low %v3717_v31, %v3721_v33  ;;  %v3696_v55 = vld [vmem:[%s5576_s1 + $0x720] sm:$0xff] }
 0x135   : > { %2065 = vmatprep.subr.bf16.mxu0 %v3757_v57  ;;  %v3697_v57 = vld [vmem:[%s5576_s1 + $0x728] sm:$0xff]  ;;  %v3821_v60 = vcombine.high %v3692_v54, %v3696_v55  ;;  %v3820_v62 = vcombine.low %v3692_v54, %v3696_v55  ;;  %v3646_v54 = vld [vmem:[%s5576_s1 + $0x590] sm:$0xff] }
 0x137   : > { %2105 = vmatpush1.bf16.msra.mxu1 %v3774_v48  ;;  %v3701_v48 = vld [vmem:[%s5576_s1 + $0x748] sm:$0xff] }
 0x138   : > { %2106 = vmatprep.subr.bf16.mxu1 %v3767_v50  ;;  %2066 = vmatpush1.bf16.msra.mxu0 %v3756_v63  ;;  %v3836_v50 = vcombine.low %v3708_v38, %v3712_v39  ;;  %v3831_v53 = vcombine.high %v3701_v48, %v3705_v49  ;;  %v3830_v59 = vcombine.low %v3701_v48, %v3705_v49  ;;  %v3659_v39 = vld [vmem:[%s5576_s1 + $0x5f8] sm:$0xff] }
 0x139   : > { %2067 = vmatprep.subr.bf16.mxu0 %v3749_v1  ;;  %v3688_v1 = vld [vmem:[%s5576_s1 + $0x6e0] sm:$0xff] }
 0x13b   : > { %2107 = vmatpush1.bf16.msra.mxu1 %v3766_v56  ;;  %v3693_v56 = vld [vmem:[%s5576_s1 + $0x708] sm:$0xff] }
 0x13c   : > { %2108 = vmatprep.subr.bf16.mxu1 %v3759_v58  ;;  %2068 = vmatpush1.bf16.msra.mxu0 %v3748_v10  ;;  %v3828_v58 = vcombine.low %v3700_v46, %v3704_v47  ;;  %v3823_v61 = vcombine.high %v3693_v56, %v3697_v57  ;;  %v3822_v63 = vcombine.low %v3693_v56, %v3697_v57  ;;  %v3650_v56 = vld [vmem:[%s5576_s1 + $0x5b0] sm:$0xff]  ;;  %v3647_v57 = vld [vmem:[%s5576_s1 + $0x598] sm:$0xff] }
 0x13d   : > { %2069 = vmatprep.subr.bf16.mxu0 %v3741_v12  ;;  %v3815_v10 = vcombine.high %v3685_v3, %v3689_v5  ;;  %v3680_v12 = vld [vmem:[%s5576_s1 + $0x6a0] sm:$0xff]  ;;  %v3776_v3 = vcombine.low %v3646_v54, %v3650_v56 }
 0x13f   : > { %2109 = vmatpush1.bf16.msra.mxu1 %v3758_v0  ;;  %v3684_v0 = vld [vmem:[%s5576_s1 + $0x6c0] sm:$0xff] }
 0x140   : > { %2110 = vmatprep.subr.bf16.mxu1 %v3751_v2  ;;  %2070 = vmatpush1.bf16.msra.mxu0 %v3740_v18  ;;  %v3813_v2 = vcombine.high %v3684_v0, %v3688_v1  ;;  %v3812_v8 = vcombine.low %v3684_v0, %v3688_v1  ;;  %v3642_v0 = vld [vmem:[%s5576_s1 + $0x570] sm:$0xff]  ;;  %v3639_v1 = vld [vmem:[%s5576_s1 + $0x558] sm:$0xff] }
 0x141   : > { %2071 = vmatprep.subr.bf16.mxu0 %v3733_v20  ;;  %v3672_v20 = vld [vmem:[%s5576_s1 + $0x660] sm:$0xff] }
 0x143   : > { %2111 = vmatpush1.bf16.msra.mxu1 %v3750_v11  ;;  %v3676_v11 = vld [vmem:[%s5576_s1 + $0x680] sm:$0xff] }
 0x144   : > { %2112 = vmatprep.subr.bf16.mxu1 %v3743_v13  ;;  %2072 = vmatpush1.bf16.msra.mxu0 %v3732_v26  ;;  %v3677_v13 = vld [vmem:[%s5576_s1 + $0x688] sm:$0xff]  ;;  %v3804_v15 = vcombine.low %v3676_v11, %v3680_v12  ;;  %v3805_v16 = vcombine.high %v3676_v11, %v3680_v12  ;;  %v3634_v11 = vld [vmem:[%s5576_s1 + $0x530] sm:$0xff]  ;;  %v3631_v12 = vld [vmem:[%s5576_s1 + $0x518] sm:$0xff] }
 0x145   : > { %2073 = vmatprep.subr.bf16.mxu0 %v3725_v28  ;;  %v3806_v17 = vcombine.low %v3677_v13, %v3681_v14  ;;  %v3807_v18 = vcombine.high %v3677_v13, %v3681_v14  ;;  %v3664_v28 = vld [vmem:[%s5576_s1 + $0x620] sm:$0xff]  ;;  %v3635_v13 = vld [vmem:[%s5576_s1 + $0x538] sm:$0xff] }
 0x147   : > { %2113 = vmatpush1.bf16.msra.mxu1 %v3742_v19  ;;  %v3668_v19 = vld [vmem:[%s5576_s1 + $0x640] sm:$0xff] }
 0x148   : > { %2114 = vmatprep.subr.bf16.mxu1 %v3735_v21  ;;  %2074 = vmatpush1.bf16.msra.mxu0 %v3724_v34  ;;  %v3669_v21 = vld [vmem:[%s5576_s1 + $0x648] sm:$0xff]  ;;  %v3797_v22 = vcombine.high %v3668_v19, %v3672_v20  ;;  %v3796_v24 = vcombine.low %v3668_v19, %v3672_v20  ;;  %v3626_v19 = vld [vmem:[%s5576_s1 + $0x4f0] sm:$0xff]  ;;  %v3623_v20 = vld [vmem:[%s5576_s1 + $0x4d8] sm:$0xff] }
 0x149   : > { %2075 = vmatprep.subr.bf16.mxu0 %v3845_v36  ;;  %v3798_v25 = vcombine.low %v3669_v21, %v3673_v23  ;;  %v3799_v26 = vcombine.high %v3669_v21, %v3673_v23  ;;  %v3658_v36 = vld [vmem:[%s5576_s1 + $0x5f0] sm:$0xff]  ;;  %v3627_v21 = vld [vmem:[%s5576_s1 + $0x4f8] sm:$0xff]  ;;  %v3762_v23 = vcombine.low %v3631_v12, %v3635_v13 }
 0x14b   : > { %2115 = vmatpush1.bf16.msra.mxu1 %v3734_v27  ;;  %v3660_v27 = vld [vmem:[%s5576_s1 + $0x600] sm:$0xff] }
 0x14c   : > { %2116 = vmatprep.subr.bf16.mxu1 %v3727_v29  ;;  %2076 = vmatpush2.bf16.msra.mxu0 %v3844_v42  ;;  %v3661_v29 = vld [vmem:[%s5576_s1 + $0x608] sm:$0xff]  ;;  %v3789_v30 = vcombine.high %v3660_v27, %v3664_v28  ;;  %v3788_v31 = vcombine.low %v3660_v27, %v3664_v28  ;;  %v3618_v27 = vld [vmem:[%s5576_s1 + $0x4b0] sm:$0xff]  ;;  %v3615_v28 = vld [vmem:[%s5576_s1 + $0x498] sm:$0xff] }
 0x14d   : > { %2077 = vmatprep.subr.bf16.mxu0 %v3837_v44  ;;  %v3790_v33 = vcombine.low %v3661_v29, %v3665_v32  ;;  %v3791_v34 = vcombine.high %v3661_v29, %v3665_v32  ;;  %v3619_v29 = vld [vmem:[%s5576_s1 + $0x4b8] sm:$0xff]  ;;  %v3754_v32 = vcombine.low %v3623_v20, %v3627_v21 }
 0x14f   : > { %2117 = vmatpush1.bf16.msra.mxu1 %v3726_v35  ;;  %v3654_v35 = vld [vmem:[%s5576_s1 + $0x5d0] sm:$0xff] }
 0x150   : > { %2118 = vmatprep.subr.bf16.mxu1 %v3847_v37  ;;  %2078 = vmatpush2.bf16.msra.mxu0 %v3836_v50  ;;  %v3655_v37 = vld [vmem:[%s5576_s1 + $0x5d8] sm:$0xff]  ;;  %v3785_v38 = vcombine.high %v3654_v35, %v3658_v36  ;;  %v3784_v40 = vcombine.low %v3654_v35, %v3658_v36  ;;  %v3610_v35 = vld [vmem:[%s5576_s1 + $0x470] sm:$0xff] }
 0x151   : > { %2079 = vmatprep.subr.bf16.mxu0 %v3829_v52  ;;  %v3786_v41 = vcombine.low %v3655_v37, %v3659_v39  ;;  %v3787_v42 = vcombine.high %v3655_v37, %v3659_v39  ;;  %v3607_v36 = vld [vmem:[%s5576_s1 + $0x458] sm:$0xff]  ;;  %v3746_v39 = vcombine.low %v3615_v28, %v3619_v29 }
 0x152   : > { %v3611_v37 = vld [vmem:[%s5576_s1 + $0x478] sm:$0xff] }
 0x153   : > { %2119 = vmatpush2.bf16.msra.mxu1 %v3846_v43 }
 0x154   : > { %2120 = vmatprep.subr.bf16.mxu1 %v3839_v45  ;;  %2080 = vmatpush2.bf16.msra.mxu0 %v3828_v58  ;;  %v3651_v58 = vld [vmem:[%s5576_s1 + $0x5b8] sm:$0xff] }
 0x155   : > { %2081 = vmatprep.subr.bf16.mxu0 %v3821_v60  ;;  %v3778_v5 = vcombine.low %v3647_v57, %v3651_v58 }
 0x157   : > { %2121 = vmatpush2.bf16.msra.mxu1 %v3838_v51 }
 0x158   : > { %2122 = vmatprep.subr.bf16.mxu1 %v3831_v53  ;;  %2082 = vmatpush2.bf16.msra.mxu0 %v3820_v62  ;;  %v3777_v62 = vcombine.high %v3646_v54, %v3650_v56 }
 0x159   : > { %2083 = vmatprep.subr.bf16.mxu0 %v3813_v2  ;;  %v3643_v2 = vld [vmem:[%s5576_s1 + $0x578] sm:$0xff] }
 0x15b   : > { %2123 = vmatpush2.bf16.msra.mxu1 %v3830_v59 }
 0x15c   : > { %2124 = vmatprep.subr.bf16.mxu1 %v3823_v61  ;;  %2084 = vmatpush2.bf16.msra.mxu0 %v3812_v8  ;;  %v3638_v61 = vld [vmem:[%s5576_s1 + $0x550] sm:$0xff] }
 0x15d   : > { %2085 = vmatprep.subr.bf16.mxu0 %v3805_v16  ;;  %v3769_v8 = vcombine.high %v3638_v61, %v3642_v0  ;;  %v3768_v14 = vcombine.low %v3638_v61, %v3642_v0  ;;  %v3719_v61 = vld [vmem:[%s5576_s1 + $0x7d8] sm:$0xff] }
 0x15f   : > { %2125 = vmatpush2.bf16.msra.mxu1 %v3822_v63  ;;  %v3779_v63 = vcombine.high %v3647_v57, %v3651_v58  ;;  %v3718_v58 = vld [vmem:[%s5576_s1 + $0x7d0] sm:$0xff] }
 0x160   : > { %2126 = vmatprep.subr.bf16.mxu1 %v3815_v10  ;;  %2086 = vmatpush2.bf16.msra.mxu0 %v3804_v15  ;;  %v3630_v10 = vld [vmem:[%s5576_s1 + $0x510] sm:$0xff]  ;;  %v3770_v15 = vcombine.low %v3639_v1, %v3643_v2 }
 0x161   : > { %2087 = vmatprep.subr.bf16.mxu0 %v3797_v22  ;;  %v3761_v16 = vcombine.high %v3630_v10, %v3634_v11  ;;  %v3760_v22 = vcombine.low %v3630_v10, %v3634_v11 }
 0x163   : > { %2127 = vmatpush2.bf16.msra.mxu1 %v3814_v9  ;;  %v3771_v9 = vcombine.high %v3639_v1, %v3643_v2 }
 0x164   : > { %2128 = vmatprep.subr.bf16.mxu1 %v3807_v18  ;;  %2088 = vmatpush2.bf16.msra.mxu0 %v3796_v24  ;;  %v3622_v18 = vld [vmem:[%s5576_s1 + $0x4d0] sm:$0xff] }
 0x165   : > { %2089 = vmatprep.subr.bf16.mxu0 %v3789_v30  ;;  %v3753_v24 = vcombine.high %v3622_v18, %v3626_v19  ;;  %v3752_v30 = vcombine.low %v3622_v18, %v3626_v19 }
 0x167   : > { %2129 = vmatpush2.bf16.msra.mxu1 %v3806_v17  ;;  %v3763_v17 = vcombine.high %v3631_v12, %v3635_v13 }
 0x168   : > { %2130 = vmatprep.subr.bf16.mxu1 %v3799_v26  ;;  %2090 = vmatpush2.bf16.msra.mxu0 %v3788_v31  ;;  %v3614_v26 = vld [vmem:[%s5576_s1 + $0x490] sm:$0xff] }
 0x169   : > { %2145 = vmatprep.subr.bf16.mxu0 %v3785_v38  ;;  %v3745_v31 = vcombine.high %v3614_v26, %v3618_v27  ;;  %v3744_v38 = vcombine.low %v3614_v26, %v3618_v27 }
 0x16b   : > { %2131 = vmatpush2.bf16.msra.mxu1 %v3798_v25  ;;  %v3755_v25 = vcombine.high %v3623_v20, %v3627_v21 }
 0x16c   : > { %2132 = vmatprep.subr.bf16.mxu1 %v3791_v34  ;;  %v3606_v34 = vld [vmem:[%s5576_s1 + $0x450] sm:$0xff] }
 0x16d   : > { %v3736_v54 = vcombine.low %v3606_v34, %v3610_v35 }
 0x16f   : > { %2133 = vmatpush2.bf16.msra.mxu1 %v3790_v33  ;;  %v3747_v33 = vcombine.high %v3615_v28, %v3619_v29 }
 0x170   : > { %2188 = vmatprep.subr.bf16.mxu1 %v3787_v42  ;;  %v3598_v42 = vld [vmem:[%s5576_s1 + $0x410] sm:$0xff] }
 0x1aa   : > { %v4877_v43 = vpop.f32.mrf.mxu1 }
 0x1ac   : > { %v4879_v44 = vpop.f32.mrf.mxu1 }
 0x1ae   : > { %v4881_v45 = vpop.f32.mrf.mxu1 }
 0x1b0   : > { %v4883_v46 = vpop.f32.mrf.mxu1 }
 0x1ea   : > { %v4885_v47 = vpop.f32.mrf.mxu1 }
 0x1ec   : > { %v4887_v48 = vpop.f32.mrf.mxu1 }
 0x1ee   : > { %v4889_v49 = vpop.f32.mrf.mxu1 }
 0x1f0   : > { %v4891_v50 = vpop.f32.mrf.mxu1 }
 0x1f2   : > { %v1279_v51 = vpop.f32.mrf.mxu1 }
 0x1f4   : > { %v1281_v52 = vpop.f32.mrf.mxu1 }
 0x1f6   : > { %v1283_v53 = vpop.f32.mrf.mxu1 }
 0x1f7   : > { %v4905_v60 = vpack.c.bf16 %v1283_v53, %v1279_v51  ;;  %v3602_v51 = vld [vmem:[%s5576_s1 + $0x430] sm:$0xff]  ;;  %v3603_v53 = vld [vmem:[%s5576_s1 + $0x438] sm:$0xff] }
 0x1f8   : > { %v1285_v55 = vpop.f32.mrf.mxu1  ;;  %v3729_v56 = vcombine.high %v3598_v42, %v3602_v51 }
 0x1f9   : > { %v1289_v59 = vpack.c.bf16 %v1285_v55, %v1281_v52  ;;  %v3599_v52 = vld [vmem:[%s5576_s1 + $0x418] sm:$0xff]  ;;  %v3738_v55 = vcombine.low %v3607_v36, %v3611_v37 }
 0x1fa   : > { %v3731_v57 = vcombine.high %v3599_v52, %v3603_v53  ;;  %v3730_v0 = vcombine.low %v3599_v52, %v3603_v53 }
 0x1fb   : > { %2091 = vmatprep.mubr.bf16.mxu0 %v1289_v59  ;;  %2134 = vmatprep.mubr.bf16.mxu1 %v1289_v59 }
 0x1fc   : > { %2092 = vmatmul.mubr.bf16.vlgmr.msra.gmra.mxu0 %v4905_v60  ;;  %2135 = vmatmul.mubr.bf16.vlgmr.msra.gmra.mxu1 %v4905_v60 }
 0x1fd   : > { %2146 = vmatpush1.bf16.msra.mxu0 %v3784_v40  ;;  %2189 = vmatpush1.bf16.msra.mxu1 %v3786_v41  ;;  %v3737_v40 = vcombine.high %v3606_v34, %v3610_v35  ;;  %v3739_v41 = vcombine.high %v3607_v36, %v3611_v37 }
 0x1fe   : > { %2177 = vmatprep.mubr.bf16.mxu0 %v1289_v59  ;;  %2220 = vmatprep.mubr.bf16.mxu1 %v1289_v59  ;;  %v3722_v59 = vld [vmem:[%s5576_s1 + $0x7f0] sm:$0xff] }
 0x1ff   : > { %2147 = vmatprep.subr.bf16.mxu0 %v3777_v62  ;;  %2190 = vmatprep.subr.bf16.mxu1 %v3779_v63  ;;  %v3723_v62 = vld [vmem:[%s5576_s1 + $0x7f8] sm:$0xff]  ;;  %v3728_v63 = vcombine.low %v3598_v42, %v3602_v51  ;;  %v3849_v1 = vcombine.high %v3718_v58, %v3722_v59  ;;  %v3848_v10 = vcombine.low %v3718_v58, %v3722_v59 }
 0x200   : > { %v3851_v2 = vcombine.high %v3719_v61, %v3723_v62  ;;  %v3850_v11 = vcombine.low %v3719_v61, %v3723_v62 }
 0x201   : > { %2148 = vmatpush1.bf16.msra.mxu0 %v3776_v3  ;;  %2191 = vmatpush1.bf16.msra.mxu1 %v3778_v5  ;;  %v3710_v3 = vld [vmem:[%s5576_s1 + $0x790] sm:$0xff] }
 0x202   : > { %2149 = vmatprep.subr.bf16.mxu0 %v3769_v8  ;;  %2192 = vmatprep.subr.bf16.mxu1 %v3771_v9  ;;  %v3714_v5 = vld [vmem:[%s5576_s1 + $0x7b0] sm:$0xff]  ;;  %v3711_v8 = vld [vmem:[%s5576_s1 + $0x798] sm:$0xff] }
 0x203   : > { %v3715_v9 = vld [vmem:[%s5576_s1 + $0x7b8] sm:$0xff]  ;;  %v3841_v12 = vcombine.high %v3710_v3, %v3714_v5  ;;  %v3840_v18 = vcombine.low %v3710_v3, %v3714_v5 }
 0x204   : > { %v3843_v13 = vcombine.high %v3711_v8, %v3715_v9  ;;  %v3842_v19 = vcombine.low %v3711_v8, %v3715_v9 }
 0x205   : > { %2150 = vmatpush1.bf16.msra.mxu0 %v3768_v14  ;;  %2193 = vmatpush1.bf16.msra.mxu1 %v3770_v15  ;;  %v3702_v14 = vld [vmem:[%s5576_s1 + $0x750] sm:$0xff] }
 0x206   : > { %2151 = vmatprep.subr.bf16.mxu0 %v3761_v16  ;;  %2194 = vmatprep.subr.bf16.mxu1 %v3763_v17  ;;  %v3706_v15 = vld [vmem:[%s5576_s1 + $0x770] sm:$0xff]  ;;  %v3703_v16 = vld [vmem:[%s5576_s1 + $0x758] sm:$0xff] }
 0x207   : > { %v3707_v17 = vld [vmem:[%s5576_s1 + $0x778] sm:$0xff]  ;;  %v3833_v20 = vcombine.high %v3702_v14, %v3706_v15  ;;  %v3832_v26 = vcombine.low %v3702_v14, %v3706_v15  ;;  %v3917_v14 = vld [vmem:[%s5576_s1 + $0x9e8] sm:$0xff]  ;;  %v3904_v15 = vld [vmem:[%s5576_s1 + $0x980] sm:$0xff] }
 0x208   : > { %v3835_v21 = vcombine.high %v3703_v16, %v3707_v17  ;;  %v3834_v27 = vcombine.low %v3703_v16, %v3707_v17  ;;  %v3908_v16 = vld [vmem:[%s5576_s1 + $0x9a0] sm:$0xff] }
 0x209   : > { %2152 = vmatpush1.bf16.msra.mxu0 %v3760_v22  ;;  %2195 = vmatpush1.bf16.msra.mxu1 %v3762_v23  ;;  %v3694_v22 = vld [vmem:[%s5576_s1 + $0x710] sm:$0xff] }
 0x20a   : > { %2153 = vmatprep.subr.bf16.mxu0 %v3753_v24  ;;  %2196 = vmatprep.subr.bf16.mxu1 %v3755_v25  ;;  %v3698_v23 = vld [vmem:[%s5576_s1 + $0x730] sm:$0xff]  ;;  %v3695_v24 = vld [vmem:[%s5576_s1 + $0x718] sm:$0xff] }
 0x20b   : > { %v3699_v25 = vld [vmem:[%s5576_s1 + $0x738] sm:$0xff]  ;;  %v3825_v28 = vcombine.high %v3694_v22, %v3698_v23  ;;  %v3824_v34 = vcombine.low %v3694_v22, %v3698_v23  ;;  %v3896_v22 = vld [vmem:[%s5576_s1 + $0x940] sm:$0xff] }
 0x20c   : > { %v3827_v29 = vcombine.high %v3695_v24, %v3699_v25  ;;  %v3826_v35 = vcombine.low %v3695_v24, %v3699_v25  ;;  %v3900_v24 = vld [vmem:[%s5576_s1 + $0x960] sm:$0xff]  ;;  %v3897_v25 = vld [vmem:[%s5576_s1 + $0x948] sm:$0xff] }
 0x20d   : > { %2154 = vmatpush1.bf16.msra.mxu0 %v3752_v30  ;;  %2197 = vmatpush1.bf16.msra.mxu1 %v3754_v32  ;;  %v3686_v30 = vld [vmem:[%s5576_s1 + $0x6d0] sm:$0xff] }
 0x20e   : > { %2155 = vmatprep.subr.bf16.mxu0 %v3745_v31  ;;  %2198 = vmatprep.subr.bf16.mxu1 %v3747_v33  ;;  %v3690_v32 = vld [vmem:[%s5576_s1 + $0x6f0] sm:$0xff]  ;;  %v3687_v31 = vld [vmem:[%s5576_s1 + $0x6d8] sm:$0xff] }
 0x20f   : > { %v3691_v33 = vld [vmem:[%s5576_s1 + $0x6f8] sm:$0xff]  ;;  %v3817_v36 = vcombine.high %v3686_v30, %v3690_v32  ;;  %v3816_v42 = vcombine.low %v3686_v30, %v3690_v32  ;;  %v3888_v32 = vld [vmem:[%s5576_s1 + $0x900] sm:$0xff] }
 0x210   : > { %v3819_v37 = vcombine.high %v3687_v31, %v3691_v33  ;;  %v3818_v51 = vcombine.low %v3687_v31, %v3691_v33  ;;  %v3892_v31 = vld [vmem:[%s5576_s1 + $0x920] sm:$0xff]  ;;  %v3889_v33 = vld [vmem:[%s5576_s1 + $0x908] sm:$0xff] }
 0x211   : > { %2156 = vmatpush1.bf16.msra.mxu0 %v3744_v38  ;;  %2199 = vmatpush1.bf16.msra.mxu1 %v3746_v39  ;;  %v3678_v38 = vld [vmem:[%s5576_s1 + $0x690] sm:$0xff] }
 0x212   : > { %2157 = vmatprep.subr.bf16.mxu0 %v3737_v40  ;;  %2200 = vmatprep.subr.bf16.mxu1 %v3739_v41  ;;  %v3682_v39 = vld [vmem:[%s5576_s1 + $0x6b0] sm:$0xff]  ;;  %v3679_v40 = vld [vmem:[%s5576_s1 + $0x698] sm:$0xff] }
 0x213   : > { %v3683_v41 = vld [vmem:[%s5576_s1 + $0x6b8] sm:$0xff]  ;;  %v3809_v52 = vcombine.high %v3678_v38, %v3682_v39  ;;  %v3808_v58 = vcombine.low %v3678_v38, %v3682_v39  ;;  %v3880_v39 = vld [vmem:[%s5576_s1 + $0x8c0] sm:$0xff] }
 0x214   : > { %v3811_v53 = vcombine.high %v3679_v40, %v3683_v41  ;;  %v3810_v59 = vcombine.low %v3679_v40, %v3683_v41  ;;  %v3884_v40 = vld [vmem:[%s5576_s1 + $0x8e0] sm:$0xff]  ;;  %v3881_v41 = vld [vmem:[%s5576_s1 + $0x8c8] sm:$0xff] }
 0x215   : > { %2158 = vmatpush1.bf16.msra.mxu0 %v3736_v54  ;;  %2201 = vmatpush1.bf16.msra.mxu1 %v3738_v55  ;;  %v3670_v54 = vld [vmem:[%s5576_s1 + $0x650] sm:$0xff] }
 0x216   : > { %2159 = vmatprep.subr.bf16.mxu0 %v3729_v56  ;;  %2202 = vmatprep.subr.bf16.mxu1 %v3731_v57  ;;  %v3674_v55 = vld [vmem:[%s5576_s1 + $0x670] sm:$0xff]  ;;  %v3671_v56 = vld [vmem:[%s5576_s1 + $0x658] sm:$0xff] }
 0x217   : > { %v3675_v57 = vld [vmem:[%s5576_s1 + $0x678] sm:$0xff]  ;;  %v3801_v61 = vcombine.high %v3670_v54, %v3674_v55  ;;  %v3800_v3 = vcombine.low %v3670_v54, %v3674_v55  ;;  %v3872_v55 = vld [vmem:[%s5576_s1 + $0x880] sm:$0xff] }
 0x218   : > { %v3803_v62 = vcombine.high %v3671_v56, %v3675_v57  ;;  %v3802_v5 = vcombine.low %v3671_v56, %v3675_v57  ;;  %v3876_v56 = vld [vmem:[%s5576_s1 + $0x8a0] sm:$0xff]  ;;  %v3873_v57 = vld [vmem:[%s5576_s1 + $0x888] sm:$0xff] }
 0x219   : > { %2160 = vmatpush1.bf16.msra.mxu0 %v3728_v63  ;;  %2203 = vmatpush1.bf16.msra.mxu1 %v3730_v0  ;;  %v3662_v63 = vld [vmem:[%s5576_s1 + $0x610] sm:$0xff] }
 0x21a   : > { %2161 = vmatprep.subr.bf16.mxu0 %v3849_v1  ;;  %2204 = vmatprep.subr.bf16.mxu1 %v3851_v2  ;;  %v3666_v0 = vld [vmem:[%s5576_s1 + $0x630] sm:$0xff]  ;;  %v3663_v1 = vld [vmem:[%s5576_s1 + $0x618] sm:$0xff] }
 0x21b   : > { %v3667_v2 = vld [vmem:[%s5576_s1 + $0x638] sm:$0xff]  ;;  %v3793_v8 = vcombine.high %v3662_v63, %v3666_v0 }
 0x21c   : > { %v3795_v9 = vcombine.high %v3663_v1, %v3667_v2 }
 0x21d   : > { %2162 = vmatpush2.bf16.msra.mxu0 %v3848_v10  ;;  %2205 = vmatpush2.bf16.msra.mxu1 %v3850_v11  ;;  %v3792_v10 = vcombine.low %v3662_v63, %v3666_v0  ;;  %v3794_v11 = vcombine.low %v3663_v1, %v3667_v2  ;;  %v3864_v0 = vld [vmem:[%s5576_s1 + $0x840] sm:$0xff]  ;;  %v3865_v2 = vld [vmem:[%s5576_s1 + $0x848] sm:$0xff] }
 0x21e   : > { %2163 = vmatprep.subr.bf16.mxu0 %v3841_v12  ;;  %2206 = vmatprep.subr.bf16.mxu1 %v3843_v13  ;;  %v4144_v12 = vld [vmem:[%s5577_s2 + $0x10] sm:$0xff]   ;;  %v3912_v13 = vld [vmem:[%s5576_s1 + $0x9c0] sm:$0xff] }
 0x21f   : > { %v3868_v1 = vld [vmem:[%s5576_s1 + $0x860] sm:$0xff] }
 0x221   : > { %2164 = vmatpush2.bf16.msra.mxu0 %v3840_v18  ;;  %2207 = vmatpush2.bf16.msra.mxu1 %v3842_v19  ;;  %v4033_v19 = vcombine.high %v3904_v15, %v3908_v16 }
 0x222   : > { %2165 = vmatprep.subr.bf16.mxu0 %v3833_v20  ;;  %2208 = vmatprep.subr.bf16.mxu1 %v3835_v21  ;;  %v3905_v20 = vld [vmem:[%s5576_s1 + $0x988] sm:$0xff] }
 0x223   : > { %v3909_v21 = vld [vmem:[%s5576_s1 + $0x9a8] sm:$0xff] }
 0x224   : > { %v4035_v23 = vcombine.high %v3905_v20, %v3909_v21 }
 0x225   : > { %2166 = vmatpush2.bf16.msra.mxu0 %v3832_v26  ;;  %2209 = vmatpush2.bf16.msra.mxu1 %v3834_v27  ;;  %v3901_v26 = vld [vmem:[%s5576_s1 + $0x968] sm:$0xff]  ;;  %v4032_v27 = vcombine.low %v3904_v15, %v3908_v16  ;;  %v3976_v15 = vld [vmem:[%s5576_s1 + $0xbc0] sm:$0xff] }
 0x226   : > { %2167 = vmatprep.subr.bf16.mxu0 %v3825_v28  ;;  %2210 = vmatprep.subr.bf16.mxu1 %v3827_v29  ;;  %v4034_v28 = vcombine.low %v3905_v20, %v3909_v21  ;;  %v4025_v29 = vcombine.high %v3896_v22, %v3900_v24  ;;  %v4027_v30 = vcombine.high %v3897_v25, %v3901_v26  ;;  %v3980_v16 = vld [vmem:[%s5576_s1 + $0xbe0] sm:$0xff] }
 0x227   : > { %v4105_v21 = vcombine.high %v3976_v15, %v3980_v16 }
 0x229   : > { %2168 = vmatpush2.bf16.msra.mxu0 %v3824_v34  ;;  %2211 = vmatpush2.bf16.msra.mxu1 %v3826_v35  ;;  %v3893_v34 = vld [vmem:[%s5576_s1 + $0x928] sm:$0xff]  ;;  %v4024_v35 = vcombine.low %v3896_v22, %v3900_v24  ;;  %v3972_v24 = vld [vmem:[%s5576_s1 + $0xba0] sm:$0xff] }
 0x22a   : > { %2169 = vmatprep.subr.bf16.mxu0 %v3817_v36  ;;  %2212 = vmatprep.subr.bf16.mxu1 %v3819_v37  ;;  %v4026_v36 = vcombine.low %v3897_v25, %v3901_v26  ;;  %v4017_v37 = vcombine.high %v3888_v32, %v3892_v31  ;;  %v4019_v38 = vcombine.high %v3889_v33, %v3893_v34  ;;  %v3969_v25 = vld [vmem:[%s5576_s1 + $0xb88] sm:$0xff] }
 0x22b   : > { %v3973_v26 = vld [vmem:[%s5576_s1 + $0xba8] sm:$0xff] }
 0x22d   : > { %2170 = vmatpush2.bf16.msra.mxu0 %v3816_v42  ;;  %2213 = vmatpush2.bf16.msra.mxu1 %v3818_v51  ;;  %v3885_v42 = vld [vmem:[%s5576_s1 + $0x8e8] sm:$0xff]  ;;  %v4016_v51 = vcombine.low %v3888_v32, %v3892_v31  ;;  %v3960_v32 = vld [vmem:[%s5576_s1 + $0xb40] sm:$0xff] }
 0x22e   : > { %2171 = vmatprep.subr.bf16.mxu0 %v3809_v52  ;;  %2214 = vmatprep.subr.bf16.mxu1 %v3811_v53  ;;  %v4018_v52 = vcombine.low %v3889_v33, %v3893_v34  ;;  %v4009_v53 = vcombine.high %v3880_v39, %v3884_v40  ;;  %v4011_v54 = vcombine.high %v3881_v41, %v3885_v42  ;;  %v3964_v31 = vld [vmem:[%s5576_s1 + $0xb60] sm:$0xff]  ;;  %v3961_v33 = vld [vmem:[%s5576_s1 + $0xb48] sm:$0xff] }
 0x22f   : > { %v3965_v34 = vld [vmem:[%s5576_s1 + $0xb68] sm:$0xff] }
 0x231   : > { %2172 = vmatpush2.bf16.msra.mxu0 %v3808_v58  ;;  %2215 = vmatpush2.bf16.msra.mxu1 %v3810_v59  ;;  %v3877_v58 = vld [vmem:[%s5576_s1 + $0x8a8] sm:$0xff]  ;;  %v4008_v59 = vcombine.low %v3880_v39, %v3884_v40  ;;  %v3952_v39 = vld [vmem:[%s5576_s1 + $0xb00] sm:$0xff] }
 0x232   : > { %2173 = vmatprep.subr.bf16.mxu0 %v3801_v61  ;;  %2216 = vmatprep.subr.bf16.mxu1 %v3803_v62  ;;  %v4010_v61 = vcombine.low %v3881_v41, %v3885_v42  ;;  %v4001_v62 = vcombine.high %v3872_v55, %v3876_v56  ;;  %v4003_v63 = vcombine.high %v3873_v57, %v3877_v58  ;;  %v3956_v40 = vld [vmem:[%s5576_s1 + $0xb20] sm:$0xff]  ;;  %v3953_v41 = vld [vmem:[%s5576_s1 + $0xb08] sm:$0xff] }
 0x233   : > { %v3957_v42 = vld [vmem:[%s5576_s1 + $0xb28] sm:$0xff] }
 0x235   : > { %2174 = vmatpush2.bf16.msra.mxu0 %v3800_v3  ;;  %2217 = vmatpush2.bf16.msra.mxu1 %v3802_v5  ;;  %v3869_v3 = vld [vmem:[%s5576_s1 + $0x868] sm:$0xff]  ;;  %v4000_v5 = vcombine.low %v3872_v55, %v3876_v56  ;;  %v4080_v55 = vcombine.low %v3952_v39, %v3956_v40  ;;  %v4082_v56 = vcombine.low %v3953_v41, %v3957_v42 }
 0x236   : > { %2175 = vmatprep.subr.bf16.mxu0 %v3793_v8  ;;  %2218 = vmatprep.subr.bf16.mxu1 %v3795_v9  ;;  %v4002_v8 = vcombine.low %v3873_v57, %v3877_v58  ;;  %v3993_v9 = vcombine.high %v3864_v0, %v3868_v1  ;;  %v3944_v57 = vld [vmem:[%s5576_s1 + $0xac0] sm:$0xff] }
 0x237   : > { %v3948_v58 = vld [vmem:[%s5576_s1 + $0xae0] sm:$0xff] }
 0x239   : > { %2176 = vmatpush2.bf16.msra.mxu0 %v3792_v10  ;;  %2219 = vmatpush2.bf16.msra.mxu1 %v3794_v11  ;;  %v3995_v10 = vcombine.high %v3865_v2, %v3869_v3  ;;  %v3856_v11 = vld [vmem:[%s5576_s1 + $0x800] sm:$0xff] }
 0x23a   : > { %2272 = vmatprep.subr.bf16.mxu0 %v4265_v4  ;;  %v3916_v4 = vld [vmem:[%s5576_s1 + $0x9e0] sm:$0xff] }
 0x23c   : > { %2178 = vmatmul.mubr.bf16.vlgmr.msra.gmra.mxu0 %v4905_v60  ;;  %2221 = vmatmul.mubr.bf16.vlgmr.msra.gmra.mxu1 %v4905_v60  ;;  %v3913_v60 = vld [vmem:[%s5576_s1 + $0x9c8] sm:$0xff] }
 0x23d   : > { %2273 = vmatpush1.bf16.msra.mxu0 %v4268_v7  ;;  %2290 = vmatprep.mubr.bf16.mxu0 %v4226_v6  ;;  %v4040_v7 = vcombine.low %v3912_v13, %v3916_v4  ;;  %v4041_v6 = vcombine.high %v3912_v13, %v3916_v4  ;;  %v4042_v17 = vcombine.low %v3913_v60, %v3917_v14  ;;  %v3857_v13 = vld [vmem:[%s5576_s1 + $0x808] sm:$0xff] }
 0x23e   : > { %v4043_v18 = vcombine.high %v3913_v60, %v3917_v14  ;;  %v3861_v4 = vld [vmem:[%s5576_s1 + $0x828] sm:$0xff]  ;;  %v3992_v60 = vcombine.low %v3864_v0, %v3868_v1 }
 0x23f   : > { %3072 = vmatprep.subr.bf16.mxu1 %v4041_v6  ;;  %v3987_v14 = vcombine.high %v3857_v13, %v3861_v4  ;;  %v3986_v20 = vcombine.low %v3857_v13, %v3861_v4  ;;  %v3928_v13 = vld [vmem:[%s5576_s1 + $0xa40] sm:$0xff] }
 0x240   : > { %3115 = vmatprep.subr.bf16.mxu0 %v4043_v18  ;;  %3073 = vmatpush1.bf16.msra.mxu1 %v4040_v7  ;;  %v3994_v7 = vcombine.low %v3865_v2, %v3869_v3  ;;  %v3981_v18 = vld [vmem:[%s5576_s1 + $0xbe8] sm:$0xff]  ;;  %v3936_v2 = vld [vmem:[%s5576_s1 + $0xa80] sm:$0xff] }
 0x241   : > { %3074 = vmatprep.subr.bf16.mxu1 %v4033_v19  ;;  %v3940_v3 = vld [vmem:[%s5576_s1 + $0xaa0] sm:$0xff] }
 0x242   : > { %v3932_v4 = vld [vmem:[%s5576_s1 + $0xa60] sm:$0xff] }
 0x244   : > { %3855 = vmatmul.mubr.msk.bf16.vlgmr.msra.gmra.mxu0 %vm229_vm0, %v4144_v12  ;;  %3075 = vmatpush1.bf16.msra.mxu1 %v4032_v27  ;;  %v3860_v12 = vld [vmem:[%s5576_s1 + $0x820] sm:$0xff]  ;;  %v4104_v27 = vcombine.low %v3976_v15, %v3980_v16 }
 0x245   : > { %3116 = vmatpush1.bf16.msra.mxu0 %v4042_v17  ;;  %3076 = vmatprep.subr.bf16.mxu1 %v4025_v29  ;;  %v3985_v6 = vcombine.high %v3856_v11, %v3860_v12  ;;  %v3977_v17 = vld [vmem:[%s5576_s1 + $0xbc8] sm:$0xff]  ;;  %v3984_v19 = vcombine.low %v3856_v11, %v3860_v12 }
 0x246   : > { %3117 = vmatprep.subr.bf16.mxu0 %v4035_v23  ;;  %v4107_v22 = vcombine.high %v3977_v17, %v3981_v18  ;;  %v3968_v23 = vld [vmem:[%s5576_s1 + $0xb80] sm:$0xff] }
 0x247   : > { %v4097_v29 = vcombine.high %v3968_v23, %v3972_v24 }
 0x248   : > { %3077 = vmatpush1.bf16.msra.mxu1 %v4024_v35  ;;  %v4096_v35 = vcombine.low %v3968_v23, %v3972_v24 }
 0x249   : > { %3118 = vmatpush1.bf16.msra.mxu0 %v4034_v28  ;;  %3078 = vmatprep.subr.bf16.mxu1 %v4017_v37  ;;  %v4106_v28 = vcombine.low %v3977_v17, %v3981_v18  ;;  %v4089_v37 = vcombine.high %v3960_v32, %v3964_v31  ;;  %v3920_v17 = vld [vmem:[%s5576_s1 + $0xa00] sm:$0xff] }
 0x24a   : > { %3119 = vmatprep.subr.bf16.mxu0 %v4027_v30  ;;  %v4099_v30 = vcombine.high %v3969_v25, %v3973_v26  ;;  %v3924_v18 = vld [vmem:[%s5576_s1 + $0xa20] sm:$0xff] }
 0x24c   : > { %3079 = vmatpush1.bf16.msra.mxu1 %v4016_v51  ;;  %v4088_v51 = vcombine.low %v3960_v32, %v3964_v31 }
 0x24d   : > { %3120 = vmatpush1.bf16.msra.mxu0 %v4026_v36  ;;  %3080 = vmatprep.subr.bf16.mxu1 %v4009_v53  ;;  %v4098_v36 = vcombine.low %v3969_v25, %v3973_v26  ;;  %v4081_v53 = vcombine.high %v3952_v39, %v3956_v40  ;;  %v5281_v25 = vld [vmem:[%s5576_s1 + $0x9d0] sm:$0xff]  ;;  %v198_v39 = vld [vmem:[%s4258_s19] sm:$0xff] }
 0x24e   : > { %3121 = vmatprep.subr.bf16.mxu0 %v4019_v38  ;;  %v4091_v38 = vcombine.high %v3961_v33, %v3965_v34  ;;  %v5286_v26 = vld [vmem:[%s5576_s1 + $0x9f0] sm:$0xff] }
 0x250   : > { %3081 = vmatpush1.bf16.msra.mxu1 %v4008_v59  ;;  %v3945_v59 = vld [vmem:[%s5576_s1 + $0xac8] sm:$0xff] }
 0x251   : > { %3122 = vmatpush1.bf16.msra.mxu0 %v4018_v52  ;;  %3082 = vmatprep.subr.bf16.mxu1 %v4001_v62  ;;  %v4090_v52 = vcombine.low %v3961_v33, %v3965_v34  ;;  %v3949_v62 = vld [vmem:[%s5576_s1 + $0xae8] sm:$0xff]  ;;  %v5306_v33 = vpop.f32.mrf.mxu0 }
 0x252   : > { %3123 = vmatprep.subr.bf16.mxu0 %v4011_v54  ;;  %v4083_v54 = vcombine.high %v3953_v41, %v3957_v42  ;;  %v4074_v0 = vcombine.low %v3945_v59, %v3949_v62  ;;  %v4075_v1 = vcombine.high %v3945_v59, %v3949_v62  ;;  %v206_v41 = vunpack.c.l.bf16 %v198_v39  ;;  %v202_v42 = vld [vmem:[%s4258_s19 + $0x20] sm:$0xff] }
 0x253   : > { %v5308_v34 = vpop.f32.mrf.mxu0 }
 0x254   : > { %3083 = vmatpush1.bf16.msra.mxu1 %v4000_v5  ;;  %v3937_v5 = vld [vmem:[%s5576_s1 + $0xa88] sm:$0xff] }
 0x255   : > { %3124 = vmatpush1.bf16.msra.mxu0 %v4010_v61  ;;  %3084 = vmatprep.subr.bf16.mxu1 %v3993_v9  ;;  %v4073_v61 = vcombine.high %v3944_v57, %v3948_v58  ;;  %v3941_v9 = vld [vmem:[%s5576_s1 + $0xaa8] sm:$0xff] }
 0x256   : > { %3125 = vmatprep.subr.bf16.mxu0 %v4003_v63  ;;  %v4072_v63 = vcombine.low %v3944_v57, %v3948_v58  ;;  %v4066_v11 = vcombine.low %v3937_v5, %v3941_v9  ;;  %v4067_v12 = vcombine.high %v3937_v5, %v3941_v9  ;;  %v215_v57 = vunpack.c.h.bf16 %v202_v42 }
 0x258   : > { %3085 = vmatpush1.bf16.msra.mxu1 %v3992_v60  ;;  %v3929_v60 = vld [vmem:[%s5576_s1 + $0xa48] sm:$0xff] }
 0x259   : > { %3126 = vmatpush1.bf16.msra.mxu0 %v4002_v8  ;;  %3086 = vmatprep.subr.bf16.mxu1 %v3985_v6  ;;  %v4065_v8 = vcombine.high %v3936_v2, %v3940_v3  ;;  %v3933_v6 = vld [vmem:[%s5576_s1 + $0xa68] sm:$0xff] }
 0x25a   : > { %3127 = vmatprep.subr.bf16.mxu0 %v3995_v10  ;;  %v4064_v10 = vcombine.low %v3936_v2, %v3940_v3  ;;  %v4058_v15 = vcombine.low %v3929_v60, %v3933_v6  ;;  %v4059_v16 = vcombine.high %v3929_v60, %v3933_v6  ;;  %v200_v3 = vld [vmem:[%s4258_s19 + $0x10] sm:$0xff] }
 0x25b   : > { %v210_v5 = vunpack.c.l.bf16 %v200_v3 }
 0x25c   : > { %3087 = vmatpush1.bf16.msra.mxu1 %v3984_v19  ;;  %v3921_v19 = vld [vmem:[%s5576_s1 + $0xa08] sm:$0xff] }
 0x25d   : > { %3128 = vmatpush1.bf16.msra.mxu0 %v3994_v7  ;;  %3088 = vmatprep.subr.bf16.mxu1 %v4105_v21  ;;  %v4057_v7 = vcombine.high %v3928_v13, %v3932_v4  ;;  %v3925_v21 = vld [vmem:[%s5576_s1 + $0xa28] sm:$0xff]  ;;  %v1222_v9 = vadd.f32 %v4885_v47, %v210_v5 }
 0x25e   : > { %3129 = vmatprep.subr.bf16.mxu0 %v3987_v14  ;;  %v4056_v14 = vcombine.low %v3928_v13, %v3932_v4  ;;  %v4050_v23 = vcombine.low %v3921_v19, %v3925_v21  ;;  %v4051_v24 = vcombine.high %v3921_v19, %v3925_v21 }
 0x260   : > { %3089 = vmatpush2.bf16.msra.mxu1 %v4104_v27  ;;  %v5291_v27 = vld [vmem:[%s5576_s1 + $0x9d8] sm:$0xff] }
 0x261   : > { %3130 = vmatpush1.bf16.msra.mxu0 %v3986_v20  ;;  %3090 = vmatprep.subr.bf16.mxu1 %v4097_v29  ;;  %v4049_v20 = vcombine.high %v3920_v17, %v3924_v18  ;;  %v5298_v29 = vld [vmem:[%s5576_s1 + $0x9f8] sm:$0xff] }
 0x262   : > { %3131 = vmatprep.subr.bf16.mxu0 %v4107_v22  ;;  %v4048_v22 = vcombine.low %v3920_v17, %v3924_v18  ;;  %v4046_v32 = vcombine.low %v5291_v27, %v5298_v29  ;;  %v4047_v31 = vcombine.high %v5291_v27, %v5298_v29  ;;  %v3895_v27 = vld [vmem:[%s5576_s1 + $0x938] sm:$0xff] }
 0x264   : > { %3091 = vmatpush2.bf16.msra.mxu1 %v4096_v35  ;;  %v5310_v35 = vpop.f32.mrf.mxu0 }
 0x265   : > { %3132 = vmatpush2.bf16.msra.mxu0 %v4106_v28  ;;  %3092 = vmatprep.subr.bf16.mxu1 %v4089_v37  ;;  %v4045_v28 = vcombine.high %v5281_v25, %v5286_v26 }
 0x266   : > { %3133 = vmatprep.subr.bf16.mxu0 %v4099_v30  ;;  %v4044_v30 = vcombine.low %v5281_v25, %v5286_v26  ;;  %v3894_v25 = vld [vmem:[%s5576_s1 + $0x930] sm:$0xff]  ;;  %v3891_v26 = vld [vmem:[%s5576_s1 + $0x918] sm:$0xff] }
 0x268   : > { %3093 = vmatpush2.bf16.msra.mxu1 %v4088_v51  ;;  %v207_v51 = vunpack.c.h.bf16 %v198_v39  ;;  %v3899_v39 = vld [vmem:[%s5576_s1 + $0x958] sm:$0xff] }
 0x269   : > { %3134 = vmatpush2.bf16.msra.mxu0 %v4098_v36  ;;  %3094 = vmatprep.subr.bf16.mxu1 %v4081_v53  ;;  %v5312_v36 = vpop.f32.mrf.mxu0  ;;  %v1218_v53 = vadd.f32 %v4877_v43, %v206_v41  ;;  %v3903_v41 = vld [vmem:[%s5576_s1 + $0x978] sm:$0xff] }
 0x26a   : > { %3135 = vmatprep.subr.bf16.mxu0 %v4091_v38 }
 0x26b   : > { %v5314_v37 = vpop.f32.mrf.mxu0 }
 0x26c   : > { %3095 = vmatpush2.bf16.msra.mxu1 %v4080_v55 }
 0x26d   : > { %3136 = vmatpush2.bf16.msra.mxu0 %v4090_v52  ;;  %3096 = vmatprep.subr.bf16.mxu1 %v4073_v61  ;;  %v5316_v38 = vpop.f32.mrf.mxu0 }
 0x26e   : > { %3137 = vmatprep.subr.bf16.mxu0 %v4083_v54  ;;  %v214_v54 = vunpack.c.l.bf16 %v202_v42 }
 0x26f   : > { %v5319_v40 = vpop.f32.mrf.mxu0 }
 0x270   : > { %3097 = vmatpush2.bf16.msra.mxu1 %v4072_v63  ;;  %v1226_v61 = vadd.f32 %v4881_v45, %v214_v54  ;;  %v4031_v54 = vcombine.high %v3899_v39, %v3903_v41 }
 0x271   : > { %3138 = vmatpush2.bf16.msra.mxu0 %v4082_v56  ;;  %3098 = vmatprep.subr.bf16.mxu1 %v4065_v8  ;;  %v5322_v52 = vpop.f32.mrf.mxu0  ;;  %v1219_v56 = vadd.f32 %v4879_v44, %v207_v51  ;;  %v204_v8 = vld [vmem:[%s4258_s19 + $0x30] sm:$0xff]  ;;  %v211_v44 = vunpack.c.h.bf16 %v200_v3 }
 0x272   : > { %3139 = vmatprep.subr.bf16.mxu0 %v4075_v1 }
 0x273   : > { %v1223_v45 = vadd.f32 %v4887_v48, %v211_v44  ;;  %v3906_v48 = vld [vmem:[%s5576_s1 + $0x990] sm:$0xff] }
 0x274   : > { %3099 = vmatpush2.bf16.msra.mxu1 %v4064_v10  ;;  %v218_v10 = vunpack.c.l.bf16 %v204_v8  ;;  %v3878_v44 = vld [vmem:[%s5576_s1 + $0x8b0] sm:$0xff] }
 0x275   : > { %3140 = vmatpush2.bf16.msra.mxu0 %v4074_v0  ;;  %3100 = vmatprep.subr.bf16.mxu1 %v4057_v7  ;;  %v1227_v0 = vadd.f32 %v4883_v46, %v215_v57  ;;  %v3882_v57 = vld [vmem:[%s5576_s1 + $0x8d0] sm:$0xff] }
 0x276   : > { %3141 = vmatprep.subr.bf16.mxu0 %v4067_v12  ;;  %v219_v12 = vunpack.c.h.bf16 %v204_v8  ;;  %v1230_v46 = vadd.f32 %v4889_v49, %v218_v10  ;;  %v3910_v49 = vld [vmem:[%s5576_s1 + $0x9b0] sm:$0xff]  ;;  %v3879_v10 = vld [vmem:[%s5576_s1 + $0x8b8] sm:$0xff] }
 0x277   : > { %v4036_v42 = vcombine.low %v3906_v48, %v3910_v49  ;;  %v3874_v8 = vld [vmem:[%s5576_s1 + $0x890] sm:$0xff] }
 0x278   : > { %3101 = vmatpush2.bf16.msra.mxu1 %v4056_v14  ;;  %v1231_v6 = vadd.f32 %v4891_v50, %v219_v12  ;;  %v3907_v50 = vld [vmem:[%s5576_s1 + $0x998] sm:$0xff]  ;;  %v4005_v12 = vcombine.high %v3874_v8, %v3878_v44 }
 0x279   : > { %3142 = vmatpush2.bf16.msra.mxu0 %v4066_v11  ;;  %3102 = vmatprep.subr.bf16.mxu1 %v4049_v20  ;;  %v3911_v20 = vld [vmem:[%s5576_s1 + $0x9b8] sm:$0xff] }
 0x27a   : > { %3143 = vmatprep.subr.bf16.mxu0 %v4059_v16  ;;  %v4038_v51 = vcombine.low %v3907_v50, %v3911_v20 }
 0x27c   : > { %3103 = vmatpush2.bf16.msra.mxu1 %v4048_v22 }
 0x27d   : > { %3144 = vmatpush2.bf16.msra.mxu0 %v4058_v15  ;;  %3158 = vmatprep.subr.bf16.mxu1 %v4045_v28  ;;  %v4039_v28 = vcombine.high %v3907_v50, %v3911_v20  ;;  %v3859_v50 = vld [vmem:[%s5576_s1 + $0x818] sm:$0xff] }
 0x27e   : > { %3145 = vmatprep.subr.bf16.mxu0 %v4051_v24  ;;  %v4037_v24 = vcombine.high %v3906_v48, %v3910_v49  ;;  %v3862_v49 = vld [vmem:[%s5576_s1 + $0x830] sm:$0xff]  ;;  %v3863_v20 = vld [vmem:[%s5576_s1 + $0x838] sm:$0xff] }
 0x281   : > { %3146 = vmatpush2.bf16.msra.mxu0 %v4050_v23  ;;  %v3898_v23 = vld [vmem:[%s5576_s1 + $0x950] sm:$0xff] }
 0x282   : > { %3201 = vmatprep.subr.bf16.mxu0 %v4047_v31  ;;  %v3902_v31 = vld [vmem:[%s5576_s1 + $0x970] sm:$0xff] }
 0x283   : > { %v4028_v29 = vcombine.low %v3898_v23, %v3902_v31 }
 0x2bc   : > { %v2093_v55 = vpop.f32.mrf.mxu0 }
 0x2bd   : > { %v5326_v58 = vadd.f32 %v2093_v55, %v1218_v53  ;;  %v4029_v53 = vcombine.high %v3898_v23, %v3902_v31  ;;  %v3890_v55 = vld [vmem:[%s5576_s1 + $0x910] sm:$0xff] }
 0x2be   : > { %v2095_v59 = vpop.f32.mrf.mxu0  ;;  %v3978_v31 = vld [vmem:[%s5576_s1 + $0xbd0] sm:$0xff] }
 0x2bf   : > { %v5329_v62 = vadd.f32 %v2095_v59, %v1219_v56  ;;  %v4023_v56 = vcombine.high %v3891_v26, %v3895_v27  ;;  %v3886_v59 = vld [vmem:[%s5576_s1 + $0x8f0] sm:$0xff] }
 0x2c0   : > { %v2097_v63 = vpop.f32.mrf.mxu0  ;;  %v4013_v3 = vcombine.high %v3882_v57, %v3886_v59 }
 0x2c1   : > { %v5332_v1 = vadd.f32 %v2097_v63, %v1226_v61  ;;  %v3883_v61 = vld [vmem:[%s5576_s1 + $0x8d8] sm:$0xff] }
 0x2c2   : > { %v2099_v2 = vpop.f32.mrf.mxu0  ;;  %v3887_v63 = vld [vmem:[%s5576_s1 + $0x8f8] sm:$0xff] }
 0x2c3   : > { %v5334_v43 = vadd.f32 %v2099_v2, %v1227_v0  ;;  %v4020_v0 = vcombine.low %v3890_v55, %v3894_v25  ;;  %v4022_v2 = vcombine.low %v3891_v26, %v3895_v27  ;;  %v4015_v5 = vcombine.high %v3883_v61, %v3887_v63  ;;  %v3974_v26 = vld [vmem:[%s5576_s1 + $0xbb0] sm:$0xff]  ;;  %v3971_v27 = vld [vmem:[%s5576_s1 + $0xb98] sm:$0xff] }
 0x2fc   : > { %v2179_v11 = vpop.f32.mrf.mxu0 }
 0x2fd   : > { %v5340_v13 = vadd.f32 %v2179_v11, %v1222_v9  ;;  %v3875_v9 = vld [vmem:[%s5576_s1 + $0x898] sm:$0xff]  ;;  %v4012_v11 = vcombine.low %v3882_v57, %v3886_v59  ;;  %v3962_v59 = vld [vmem:[%s5576_s1 + $0xb50] sm:$0xff] }
 0x2fe   : > { %v2181_v4 = vpop.f32.mrf.mxu0 }
 0x2ff   : > { %v5343_v60 = vadd.f32 %v2181_v4, %v1223_v45  ;;  %v4014_v45 = vcombine.low %v3883_v61, %v3887_v63  ;;  %v4007_v4 = vcombine.high %v3875_v9, %v3879_v10  ;;  %v3966_v61 = vld [vmem:[%s5576_s1 + $0xb70] sm:$0xff]  ;;  %v3963_v63 = vld [vmem:[%s5576_s1 + $0xb58] sm:$0xff] }
 0x300   : > { %v2183_v7 = vpop.f32.mrf.mxu0 }
 0x301   : > { %v5346_v14 = vadd.f32 %v2183_v7, %v1230_v46  ;;  %v3866_v46 = vld [vmem:[%s5576_s1 + $0x850] sm:$0xff] }
 0x302   : > { %v2185_v15 = vpop.f32.mrf.mxu0  ;;  %v3870_v7 = vld [vmem:[%s5576_s1 + $0x870] sm:$0xff] }
 0x303   : > { %v5348_v16 = vadd.f32 %v2185_v15, %v1231_v6  ;;  %v3867_v6 = vld [vmem:[%s5576_s1 + $0x858] sm:$0xff] }
 0x304   : > { %v2292_v47 = vpop.f32.mrf.mxu0  ;;  %v3871_v15 = vld [vmem:[%s5576_s1 + $0x878] sm:$0xff] }
 0x305   : > { %v3999_v48 = vcombine.high %v3867_v6, %v3871_v15  ;;  %v3998_v23 = vcombine.low %v3867_v6, %v3871_v15  ;;  %v3950_v6 = vld [vmem:[%s5576_s1 + $0xaf0] sm:$0xff]  ;;  %v3947_v15 = vld [vmem:[%s5576_s1 + $0xad8] sm:$0xff] }
 0x306   : > { %v2294_v17 = vpop.f32.mrf.mxu0 }
 0x308   : > { %v2296_v18 = vpop.f32.mrf.mxu0 }
 0x309   : > { %v5362_v22 = vpack.c.bf16 %v2296_v18, %v2292_v47  ;;  %v4004_v47 = vcombine.low %v3874_v8, %v3878_v44  ;;  %v3997_v18 = vcombine.high %v3866_v46, %v3870_v7  ;;  %v3954_v44 = vld [vmem:[%s5576_s1 + $0xb10] sm:$0xff] }
 0x30a   : > { %v2298_v19 = vpop.f32.mrf.mxu0 }
 0x30b   : > { %v2302_v21 = vpack.c.bf16 %v2298_v19, %v2294_v17  ;;  %v4006_v17 = vcombine.low %v3875_v9, %v3879_v10  ;;  %v3858_v19 = vld [vmem:[%s5576_s1 + $0x810] sm:$0xff]  ;;  %v3955_v10 = vld [vmem:[%s5576_s1 + $0xb18] sm:$0xff] }
 0x30c   : > { %v3958_v9 = vld [vmem:[%s5576_s1 + $0xb30] sm:$0xff] }
 0x30d   : > { %3104 = vmatprep.mubr.bf16.mxu1 %v2302_v21  ;;  %3147 = vmatprep.mubr.bf16.mxu0 %v2302_v21 }
 0x30e   : > { %3105 = vmatmul.mubr.bf16.vlgmr.msra.gmra.mxu1 %v5362_v22  ;;  %3148 = vmatmul.mubr.bf16.vlgmr.msra.gmra.mxu0 %v5362_v22 }
 0x30f   : > { %3159 = vmatpush1.bf16.msra.mxu1 %v4044_v30  ;;  %3202 = vmatpush1.bf16.msra.mxu0 %v4046_v32  ;;  %v4030_v30 = vcombine.low %v3899_v39, %v3903_v41  ;;  %v4021_v32 = vcombine.high %v3890_v55, %v3894_v25  ;;  %v3982_v39 = vld [vmem:[%s5576_s1 + $0xbf0] sm:$0xff]  ;;  %v3979_v41 = vld [vmem:[%s5576_s1 + $0xbd8] sm:$0xff] }
 0x310   : > { %3190 = vmatprep.mubr.bf16.mxu1 %v2302_v21  ;;  %3233 = vmatprep.mubr.bf16.mxu0 %v2302_v21  ;;  %v3996_v21 = vcombine.low %v3866_v46, %v3870_v7  ;;  %v3970_v25 = vld [vmem:[%s5576_s1 + $0xb90] sm:$0xff] }
 0x311   : > { %3160 = vmatprep.subr.bf16.mxu1 %v4037_v24  ;;  %3203 = vmatprep.subr.bf16.mxu0 %v4039_v28  ;;  %v3989_v24 = vcombine.high %v3858_v19, %v3862_v49  ;;  %v3991_v28 = vcombine.high %v3859_v50, %v3863_v20  ;;  %v3946_v7 = vld [vmem:[%s5576_s1 + $0xad0] sm:$0xff] }
 0x313   : > { %3161 = vmatpush1.bf16.msra.mxu1 %v4036_v42  ;;  %3204 = vmatpush1.bf16.msra.mxu0 %v4038_v51  ;;  %v3983_v42 = vld [vmem:[%s5576_s1 + $0xbf8] sm:$0xff]  ;;  %v3988_v51 = vcombine.low %v3858_v19, %v3862_v49  ;;  %v3938_v49 = vld [vmem:[%s5576_s1 + $0xa90] sm:$0xff] }
 0x314   : > { %3162 = vmatprep.subr.bf16.mxu1 %v4029_v53  ;;  %3205 = vmatprep.subr.bf16.mxu0 %v4031_v54  ;;  %v3990_v53 = vcombine.low %v3859_v50, %v3863_v20  ;;  %v4109_v54 = vcombine.high %v3978_v31, %v3982_v39  ;;  %v4111_v55 = vcombine.high %v3979_v41, %v3983_v42  ;;  %v3942_v50 = vld [vmem:[%s5576_s1 + $0xab0] sm:$0xff]  ;;  %v3939_v20 = vld [vmem:[%s5576_s1 + $0xa98] sm:$0xff] }
 0x317   : > { %3163 = vmatpush1.bf16.msra.mxu1 %v4028_v29  ;;  %3206 = vmatpush1.bf16.msra.mxu0 %v4030_v30  ;;  %v3975_v29 = vld [vmem:[%s5576_s1 + $0xbb8] sm:$0xff]  ;;  %v4108_v30 = vcombine.low %v3978_v31, %v3982_v39  ;;  %v3930_v39 = vld [vmem:[%s5576_s1 + $0xa50] sm:$0xff] }
 0x318   : > { %3164 = vmatprep.subr.bf16.mxu1 %v4021_v32  ;;  %3207 = vmatprep.subr.bf16.mxu0 %v4023_v56  ;;  %v4110_v32 = vcombine.low %v3979_v41, %v3983_v42  ;;  %v4101_v56 = vcombine.high %v3970_v25, %v3974_v26  ;;  %v4103_v57 = vcombine.high %v3971_v27, %v3975_v29  ;;  %v3934_v41 = vld [vmem:[%s5576_s1 + $0xa70] sm:$0xff]  ;;  %v3931_v42 = vld [vmem:[%s5576_s1 + $0xa58] sm:$0xff] }
 0x31b   : > { %3165 = vmatpush1.bf16.msra.mxu1 %v4020_v0  ;;  %3208 = vmatpush1.bf16.msra.mxu0 %v4022_v2  ;;  %v3967_v0 = vld [vmem:[%s5576_s1 + $0xb78] sm:$0xff]  ;;  %v4100_v2 = vcombine.low %v3970_v25, %v3974_v26  ;;  %v3922_v26 = vld [vmem:[%s5576_s1 + $0xa10] sm:$0xff] }
 0x31c   : > { %3166 = vmatprep.subr.bf16.mxu1 %v4013_v3  ;;  %3209 = vmatprep.subr.bf16.mxu0 %v4015_v5  ;;  %v4102_v3 = vcombine.low %v3971_v27, %v3975_v29  ;;  %v4093_v5 = vcombine.high %v3962_v59, %v3966_v61  ;;  %v4095_v8 = vcombine.high %v3963_v63, %v3967_v0  ;;  %v3926_v27 = vld [vmem:[%s5576_s1 + $0xa30] sm:$0xff]  ;;  %v3923_v29 = vld [vmem:[%s5576_s1 + $0xa18] sm:$0xff] }
 0x31f   : > { %3167 = vmatpush1.bf16.msra.mxu1 %v4012_v11  ;;  %3210 = vmatpush1.bf16.msra.mxu0 %v4014_v45  ;;  %v3959_v11 = vld [vmem:[%s5576_s1 + $0xb38] sm:$0xff]  ;;  %v4092_v45 = vcombine.low %v3962_v59, %v3966_v61  ;;  %v4052_v61 = vcombine.low %v3922_v26, %v3926_v27 }
 0x320   : > { %3168 = vmatprep.subr.bf16.mxu1 %v4005_v12  ;;  %3211 = vmatprep.subr.bf16.mxu0 %v4007_v4  ;;  %v4094_v12 = vcombine.low %v3963_v63, %v3967_v0  ;;  %v4085_v4 = vcombine.high %v3954_v44, %v3958_v9  ;;  %v4087_v46 = vcombine.high %v3955_v10, %v3959_v11  ;;  %v2136_v0 = vpop.f32.mrf.mxu1 }
 0x323   : > { %3169 = vmatpush1.bf16.msra.mxu1 %v4004_v47  ;;  %3212 = vmatpush1.bf16.msra.mxu0 %v4006_v17  ;;  %v3951_v47 = vld [vmem:[%s5576_s1 + $0xaf8] sm:$0xff]  ;;  %v4084_v17 = vcombine.low %v3954_v44, %v3958_v9 }
 0x324   : > { %3170 = vmatprep.subr.bf16.mxu1 %v3997_v18  ;;  %3213 = vmatprep.subr.bf16.mxu0 %v3999_v48  ;;  %v4086_v18 = vcombine.low %v3955_v10, %v3959_v11  ;;  %v4077_v48 = vcombine.high %v3946_v7, %v3950_v6  ;;  %v4079_v19 = vcombine.high %v3947_v15, %v3951_v47  ;;  %v199_v10 = vld [vmem:[%s4258_s19 + $0x8] sm:$0xff] }
 0x327   : > { %3171 = vmatpush1.bf16.msra.mxu1 %v3996_v21  ;;  %3214 = vmatpush1.bf16.msra.mxu0 %v3998_v23  ;;  %v3943_v21 = vld [vmem:[%s5576_s1 + $0xab8] sm:$0xff]  ;;  %v4076_v23 = vcombine.low %v3946_v7, %v3950_v6  ;;  %v209_v7 = vunpack.c.h.bf16 %v199_v10 }
 0x328   : > { %3172 = vmatprep.subr.bf16.mxu1 %v3989_v24  ;;  %3215 = vmatprep.subr.bf16.mxu0 %v3991_v28  ;;  %v4078_v24 = vcombine.low %v3947_v15, %v3951_v47  ;;  %v4069_v28 = vcombine.high %v3938_v49, %v3942_v50  ;;  %v4071_v31 = vcombine.high %v3939_v20, %v3943_v21 }
 0x32b   : > { %3173 = vmatpush1.bf16.msra.mxu1 %v3988_v51  ;;  %3216 = vmatpush1.bf16.msra.mxu0 %v3990_v53  ;;  %v3935_v51 = vld [vmem:[%s5576_s1 + $0xa78] sm:$0xff]  ;;  %v4068_v53 = vcombine.low %v3938_v49, %v3942_v50 }
 0x32c   : > { %3174 = vmatprep.subr.bf16.mxu1 %v4109_v54  ;;  %3217 = vmatprep.subr.bf16.mxu0 %v4111_v55  ;;  %v4070_v54 = vcombine.low %v3939_v20, %v3943_v21  ;;  %v4061_v55 = vcombine.high %v3930_v39, %v3934_v41  ;;  %v4063_v25 = vcombine.high %v3931_v42, %v3935_v51 }
 0x32f   : > { %3175 = vmatpush2.bf16.msra.mxu1 %v4108_v30  ;;  %3218 = vmatpush2.bf16.msra.mxu0 %v4110_v32  ;;  %v3927_v30 = vld [vmem:[%s5576_s1 + $0xa38] sm:$0xff]  ;;  %v4060_v32 = vcombine.low %v3930_v39, %v3934_v41 }
 0x330   : > { %3176 = vmatprep.subr.bf16.mxu1 %v4101_v56  ;;  %3219 = vmatprep.subr.bf16.mxu0 %v4103_v57  ;;  %v4062_v56 = vcombine.low %v3931_v42, %v3935_v51  ;;  %v4053_v57 = vcombine.high %v3922_v26, %v3926_v27  ;;  %v4055_v59 = vcombine.high %v3923_v29, %v3927_v30  ;;  %v201_v42 = vld [vmem:[%s4258_s19 + $0x18] sm:$0xff] }
 0x331   : > { %v4054_v63 = vcombine.low %v3923_v29, %v3927_v30  ;;  %v205_v27 = vld [vmem:[%s4258_s19 + $0x38] sm:$0xff] }
 0x333   : > { %3177 = vmatpush2.bf16.msra.mxu1 %v4100_v2  ;;  %3220 = vmatpush2.bf16.msra.mxu0 %v4102_v3  ;;  %v2138_v2 = vpop.f32.mrf.mxu1 }
 0x334   : > { %3178 = vmatprep.subr.bf16.mxu1 %v4093_v5  ;;  %3221 = vmatprep.subr.bf16.mxu0 %v4095_v8 }
 0x335   : > { %v2140_v3 = vpop.f32.mrf.mxu1 }
 0x337   : > { %3179 = vmatpush2.bf16.msra.mxu1 %v4092_v45  ;;  %3222 = vmatpush2.bf16.msra.mxu0 %v4094_v12  ;;  %v2142_v5 = vpop.f32.mrf.mxu1  ;;  %v208_v12 = vunpack.c.l.bf16 %v199_v10 }
 0x338   : > { %3180 = vmatprep.subr.bf16.mxu1 %v4085_v4  ;;  %3223 = vmatprep.subr.bf16.mxu0 %v4087_v46  ;;  %v203_v46 = vld [vmem:[%s4258_s19 + $0x28] sm:$0xff] }
 0x339   : > { %v2222_v8 = vpop.f32.mrf.mxu1  ;;  %v1220_v15 = vadd.f32 %v5306_v33, %v208_v12 }
 0x33b   : > { %3181 = vmatpush2.bf16.msra.mxu1 %v4084_v17  ;;  %3224 = vmatpush2.bf16.msra.mxu0 %v4086_v18  ;;  %v2224_v44 = vpop.f32.mrf.mxu1  ;;  %v1221_v17 = vadd.f32 %v5308_v34, %v209_v7  ;;  %v217_v18 = vunpack.c.h.bf16 %v203_v46 }
 0x33c   : > { %3182 = vmatprep.subr.bf16.mxu1 %v4077_v48  ;;  %3225 = vmatprep.subr.bf16.mxu0 %v4079_v19  ;;  %v2233_v48 = vadd.f32 %v2136_v0, %v1220_v15 }
 0x33d   : > { %v5542_v9 = vpop.f32.mrf.mxu1  ;;  %v2234_v20 = vadd.f32 %v2138_v2, %v1221_v17 }
 0x33f   : > { %3183 = vmatpush2.bf16.msra.mxu1 %v4076_v23  ;;  %3226 = vmatpush2.bf16.msra.mxu0 %v4078_v24  ;;  %v5545_v11 = vpop.f32.mrf.mxu1 }
 0x340   : > { %3184 = vmatprep.subr.bf16.mxu1 %v4069_v28  ;;  %3227 = vmatprep.subr.bf16.mxu0 %v4071_v31  ;;  %v1229_v28 = vadd.f32 %v5312_v36, %v217_v18  ;;  %v213_v36 = vunpack.c.h.bf16 %v201_v42 }
 0x342   : > { %v2242_v51 = vadd.f32 %v2142_v5, %v1229_v28 }
 0x343   : > { %3185 = vmatpush2.bf16.msra.mxu1 %v4068_v53  ;;  %3228 = vmatpush2.bf16.msra.mxu0 %v4070_v54 }
 0x344   : > { %3186 = vmatprep.subr.bf16.mxu1 %v4061_v55  ;;  %3229 = vmatprep.subr.bf16.mxu0 %v4063_v25  ;;  %v212_v25 = vunpack.c.l.bf16 %v201_v42 }
 0x347   : > { %3187 = vmatpush2.bf16.msra.mxu1 %v4060_v32  ;;  %3230 = vmatpush2.bf16.msra.mxu0 %v4062_v56  ;;  %v220_v32 = vunpack.c.l.bf16 %v205_v27  ;;  %v1225_v56 = vadd.f32 %v5316_v38, %v213_v36 }
 0x348   : > { %3188 = vmatprep.subr.bf16.mxu1 %v4053_v57  ;;  %3231 = vmatprep.subr.bf16.mxu0 %v4055_v59  ;;  %v221_v57 = vunpack.c.h.bf16 %v205_v27 }
 0x349   : > { %v2238_v0 = vadd.f32 %v2224_v44, %v1225_v56 }
 0x34b   : > { %3189 = vmatpush2.bf16.msra.mxu1 %v4052_v61  ;;  %3232 = vmatpush2.bf16.msra.mxu0 %v4054_v63 }
 0x34e   : > { %3191 = vmatmul.mubr.bf16.vlgmr.msra.gmra.mxu1 %v5362_v22  ;;  %3234 = vmatmul.mubr.bf16.vlgmr.msra.gmra.mxu0 %v5362_v22  ;;  %v216_v22 = vunpack.c.l.bf16 %v203_v46 }
 0x350   : > { %v1228_v50 = vadd.f32 %v5310_v35, %v216_v22 }
 0x352   : > { %v2241_v33 = vadd.f32 %v2140_v3, %v1228_v50  ;;  %v1232_v3 = vadd.f32 %v5319_v40, %v220_v32 }
 0x354   : > { %v2245_v46 = vadd.f32 %v5542_v9, %v1232_v3 }
 0x3ce   : > { %v3149_v45 = vpop.f32.mrf.mxu0  ;;  %v3106_v4 = vpop.f32.mrf.mxu1 }
 0x3cf   : > { %v3244_v19 = vadd.f32 %v3106_v4, %v5326_v58  ;;  %v3246_v21 = vadd.f32 %v3149_v45, %v2233_v48  ;;  %v1233_v45 = vadd.f32 %v5322_v52, %v221_v57 }
 0x3d0   : > { %v3151_v6 = vpop.f32.mrf.mxu0  ;;  %v3108_v47 = vpop.f32.mrf.mxu1 }
 0x3d1   : > { %v3245_v24 = vadd.f32 %v3108_v47, %v5329_v62  ;;  %v3247_v31 = vadd.f32 %v3151_v6, %v2234_v20  ;;  %v4112_v39 = vmul.f32 -1.442695, %v3244_v19  ;;  %v4114_v58 = vmul.f32 -1.442695, %v3246_v21 }
 0x3d2   : > { %v3153_v49 = vpop.f32.mrf.mxu0  ;;  %v3110_v23 = vpop.f32.mrf.mxu1 }
 0x3d3   : > { %v3252_v34 = vadd.f32 %v3110_v23, %v5332_v1  ;;  %v3254_v53 = vadd.f32 %v3153_v49, %v2241_v33  ;;  %v4113_v54 = vmul.f32 -1.442695, %v3245_v24  ;;  %v4115_v35 = vmul.f32 -1.442695, %v3247_v31 }
 0x3d4   : > { %v3155_v41 = vpop.f32.mrf.mxu0  ;;  %4145 = vpow2.f32 %v4112_v39  ;;  %v3112_v29 = vpop.f32.mrf.mxu1  ;;  %v1224_v1 = vadd.f32 %v5314_v37, %v212_v25 }
 0x3d5   : > { %v3255_v55 = vadd.f32 %v3155_v41, %v2242_v51  ;;  %v4120_v26 = vmul.f32 -1.442695, %v3252_v34  ;;  %4147 = vpow2.f32 %v4114_v58  ;;  %v4122_v62 = vmul.f32 -1.442695, %v3254_v53 }
 0x3d6   : > { %4149 = vpow2.f32 %v4113_v54  ;;  %v2237_v59 = vadd.f32 %v2222_v8, %v1224_v1  ;;  %v3253_v61 = vadd.f32 %v3112_v29, %v5334_v43  ;;  %v2246_v8 = vadd.f32 %v5545_v11, %v1233_v45 }
 0x3d7   : > { %4151 = vpow2.f32 %v4115_v35  ;;  %v4123_v30 = vmul.f32 -1.442695, %v3255_v55 }
 0x3d8   : > { %4153 = vpow2.f32 %v4120_v26  ;;  %v4121_v37 = vmul.f32 -1.442695, %v3253_v61 }
 0x3d9   : > { %4155 = vpow2.f32 %v4122_v62 }
 0x3da   : > { %4157 = vpow2.f32 %v4123_v30 }
 0x3e1   : > { %v4146_v43 = vpop.eup %4145 }
 0x3e2   : > { %v4148_v22 = vpop.eup %4147  ;;  %v3308_v18 = vadd.f32 1.0, %v4146_v43  ;;  %v3359_v43 = vld [vmem:[#allocation3 + $0x10] sm:$0xff] }
 0x3e3   : > { %v4150_v47 = vpop.eup %4149  ;;  %v3310_v9 = vadd.f32 1.0, %v4148_v22 }
 0x3e4   : > { %v4152_v17 = vpop.eup %4151  ;;  %v3309_v50 = vadd.f32 1.0, %v4150_v47 }
 0x3e5   : > { %v4154_v19 = vpop.eup %4153  ;;  %v3311_v21 = vadd.f32 1.0, %v4152_v17 }
 0x3e6   : > { %v4156_v11 = vpop.eup %4155  ;;  %v3316_v24 = vadd.f32 1.0, %v4154_v19 }
 0x3e7   : > { %v4158_v23 = vpop.eup %4157  ;;  %v3318_v33 = vadd.f32 1.0, %v4156_v11 }
 0x3e8   : > { %v3319_v41 = vadd.f32 1.0, %v4158_v23 }
 0x40e   : > { %v3235_v63 = vpop.f32.mrf.mxu0  ;;  %v3192_v5 = vpop.f32.mrf.mxu1 }
 0x40f   : > { %v3250_v2 = vadd.f32 %v3235_v63, %v2237_v59  ;;  %v3248_v20 = vadd.f32 %v3192_v5, %v5340_v13  ;;  %v3356_v59 = vld [vmem:[#allocation3] sm:$0xff] }
 0x410   : > { %v3237_v10 = vpop.f32.mrf.mxu0  ;;  %v3194_v6 = vpop.f32.mrf.mxu1 }
 0x411   : > { %v4118_v12 = vmul.f32 -1.442695, %v3250_v2  ;;  %v3251_v4 = vadd.f32 %v3237_v10, %v2238_v0  ;;  %v3249_v28 = vadd.f32 %v3194_v6, %v5343_v60  ;;  %v4116_v39 = vmul.f32 -1.442695, %v3248_v20  ;;  %v3357_v0 = vld [vmem:[#allocation3 + $0x18] sm:$0xff] }
 0x412   : > { %v3239_v38 = vpop.f32.mrf.mxu0  ;;  %v3196_v49 = vpop.f32.mrf.mxu1 }
 0x413   : > { %v4119_v7 = vmul.f32 -1.442695, %v3251_v4  ;;  %4159 = vpow2.f32 %v4118_v12  ;;  %v3258_v44 = vadd.f32 %v3239_v38, %v2245_v46  ;;  %v3256_v34 = vadd.f32 %v3196_v49, %v5346_v14 }
 0x414   : > { %v3241_v15 = vpop.f32.mrf.mxu0  ;;  %4161 = vpow2.f32 %v4121_v37  ;;  %v3198_v31 = vpop.f32.mrf.mxu1  ;;  %v4117_v42 = vmul.f32 -1.442695, %v3249_v28  ;;  %v3358_v37 = vld [vmem:[#allocation3 + $0x8] sm:$0xff] }
 0x415   : > { %v3259_v40 = vadd.f32 %v3241_v15, %v2246_v8  ;;  %4163 = vpow2.f32 %v4119_v7  ;;  %v4126_v52 = vmul.f32 -1.442695, %v3258_v44  ;;  %v3257_v13 = vadd.f32 %v3198_v31, %v5348_v16 }
 0x416   : > { %v4124_v58 = vmul.f32 -1.442695, %v3256_v34 }
 0x417   : > { %v4127_v48 = vmul.f32 -1.442695, %v3259_v40  ;;  %4165 = vpow2.f32 %v4126_v52  ;;  %v4125_v35 = vmul.f32 -1.442695, %v3257_v13 }
 0x419   : > { %4167 = vpow2.f32 %v4127_v48 }
 0x41a   : > { %4169 = vrcp.f32 %v3308_v18 }
 0x41b   : > { %4171 = vrcp.f32 %v3310_v9 }
 0x41c   : > { %4173 = vrcp.f32 %v3309_v50 }
 0x41d   : > { %4175 = vrcp.f32 %v3311_v21 }
 0x41e   : > { %4177 = vrcp.f32 %v3316_v24 }
 0x41f   : > { %4179 = vrcp.f32 %v3318_v33 }
 0x420   : > { %v4160_v51 = vpop.eup %4159  ;;  %4181 = vpow2.f32 %v4116_v39 }
 0x421   : > { %v4162_v53 = vpop.eup %4161  ;;  %4183 = vrcp.f32 %v3319_v41  ;;  %v3314_v60 = vadd.f32 1.0, %v4160_v51 }
 0x422   : > { %v4164_v54 = vpop.eup %4163  ;;  %4185 = vpow2.f32 %v4117_v42  ;;  %v3317_v14 = vadd.f32 1.0, %v4162_v53 }
 0x423   : > { %4187 = vrcp.f32 %v3314_v60  ;;  %v3315_v55 = vadd.f32 1.0, %v4164_v54 }
 0x424   : > { %v4166_v25 = vpop.eup %4165  ;;  %4189 = vpow2.f32 %v4124_v58 }
 0x425   : > { %4191 = vrcp.f32 %v3315_v55  ;;  %v3322_v26 = vadd.f32 1.0, %v4166_v25 }
 0x426   : > { %v4168_v62 = vpop.eup %4167  ;;  %4193 = vpow2.f32 %v4125_v35 }
 0x427   : > { %v4170_v16 = vpop.eup %4169  ;;  %4195 = vrcp.f32 %v3322_v26  ;;  %v3323_v36 = vadd.f32 1.0, %v4168_v62 }
 0x428   : > { %v4172_v27 = vpop.eup %4171  ;;  %4197 = vrcp.f32 %v3317_v14 }
 0x429   : > { %v4174_v29 = vpop.eup %4173  ;;  %4199 = vrcp.f32 %v3323_v36  ;;  %v3360_v5 = vmul.f32 %v4172_v27, %v3356_v59 }
 0x42a   : > { %v4176_v30 = vpop.eup %4175 }
 0x42b   : > { %v4178_v1 = vpop.eup %4177  ;;  %v3361_v46 = vmul.f32 %v4176_v30, %v3357_v0 }
 0x42c   : > { %v4180_v32 = vpop.eup %4179 }
 0x42d   : > { %v4182_v56 = vpop.eup %4181  ;;  %v3362_v15 = vmul.f32 %v4180_v32, %v3358_v37 }
 0x42e   : > { %v4184_v57 = vpop.eup %4183  ;;  %v3312_v2 = vadd.f32 1.0, %v4182_v56 }
 0x42f   : > { %v4186_v61 = vpop.eup %4185  ;;  %v3363_v17 = vmul.f32 %v4184_v57, %v3359_v43 }
 0x430   : > { %v4188_v63 = vpop.eup %4187  ;;  %v3313_v12 = vadd.f32 1.0, %v4186_v61  ;;  %4201 = vrcp.f32 %v3312_v2 }
 0x431   : > { %v4190_v3 = vpop.eup %4189  ;;  %v3364_v10 = vmul.f32 %v4188_v63, %v4170_v16 }
 0x432   : > { %v4192_v45 = vpop.eup %4191  ;;  %v3320_v6 = vadd.f32 1.0, %v4190_v3 }
 0x433   : > { %v4194_v4 = vpop.eup %4193  ;;  %v3368_v38 = vadd.f32 %v3364_v10, %v3360_v5  ;;  %v3365_v8 = vmul.f32 %v4192_v45, %v4174_v29 }
 0x434   : > { %v4196_v7 = vpop.eup %4195  ;;  %v3321_v52 = vadd.f32 1.0, %v4194_v4 }
 0x435   : > { %v4198_v44 = vpop.eup %4197  ;;  %4203 = vtanh.f32 %v3368_v38  ;;  %3380 = vst [vmem:[#allocation3] sm:$0xff] %v3368_v38  ;;  %v3369_v22 = vadd.f32 %v3365_v8, %v3361_v46  ;;  %v3366_v40 = vmul.f32 %v4196_v7, %v4178_v1 }
 0x436   : > { %v4200_v47 = vpop.eup %4199  ;;  %4205 = vrcp.f32 %v3313_v12 }
 0x437   : > { %4207 = vtanh.f32 %v3369_v22  ;;  %3381 = vst [vmem:[#allocation3 + $0x18] sm:$0xff] %v3369_v22  ;;  %v3370_v18 = vadd.f32 %v3366_v40, %v3362_v15  ;;  %v3367_v48 = vmul.f32 %v4200_v47, %v4198_v44 }
 0x438   : > { %4209 = vrcp.f32 %v3320_v6 }
 0x439   : > { %4211 = vtanh.f32 %v3370_v18  ;;  %3382 = vst [vmem:[#allocation3 + $0x8] sm:$0xff] %v3370_v18  ;;  %v3371_v19 = vadd.f32 %v3367_v48, %v3363_v17 }
 0x43a   : > { %4213 = vrcp.f32 %v3321_v52 }
 0x43b   : > { %4215 = vtanh.f32 %v3371_v19  ;;  %3383 = vst [vmem:[#allocation3 + $0x10] sm:$0xff] %v3371_v19 }
 0x43d   : > { %v4202_v9 = vpop.eup %4201 }
 0x442   : > { %v4204_v49 = vpop.eup %4203 }
 0x443   : > { %v4206_v11 = vpop.eup %4205  ;;  %v3376_v50 = vmul.f32 %v4204_v49, %v4202_v9 }
 0x444   : > { %v4208_v20 = vpop.eup %4207 }
 0x445   : > { %v4210_v21 = vpop.eup %4209  ;;  %3384 = vst [vmem:[#allocation2 + $0x10] sm:$0xff] %v3376_v50  ;;  %3388 = vst [vmem:[%s4263_s22] sm:$0xff] %v3376_v50  ;;  %v3377_v23 = vmul.f32 %v4208_v20, %v4206_v11 }
 0x446   : > { %v4212_v24 = vpop.eup %4211 }
 0x447   : > { %v4214_v28 = vpop.eup %4213  ;;  %3385 = vst [vmem:[#allocation2] sm:$0xff] %v3377_v23  ;;  %3389 = vst [vmem:[%s4263_s22 + $0x8] sm:$0xff] %v3377_v23  ;;  %v3378_v33 = vmul.f32 %v4212_v24, %v4210_v21 }
 0x448   : > { %v4216_v31 = vpop.eup %4215 }
 0x449   : > { %3386 = vst [vmem:[#allocation2 + $0x18] sm:$0xff] %v3378_v33  ;;  %3390 = vst [vmem:[%s4263_s22 + $0x10] sm:$0xff] %v3378_v33  ;;  %v3379_v39 = vmul.f32 %v4216_v31, %v4214_v28 }
 0x44b   : > { %3387 = vst [vmem:[#allocation2 + $0x8] sm:$0xff] %v3379_v39  ;;  %3391 = vst [vmem:[%s4263_s22 + $0x18] sm:$0xff] %v3379_v39 }
 0x44c PF: > { %s13_s12 = sadd.s32 1, %s4223_s12  }
 0x44d   : > { %p10_p5 = scmp.ge.s32.totalorder %s13_s12, 6  }
 0x44f   :  { %12 = sbr.rel (!%p10_p5) target bundleno = 1 (0x1), region = 70 }

</bundles_post_ra>
